<compile_context>
chip_gen: v6e
topology: v6e:2x2x1
jax: 0.10.0
libtpu: 0.0.40
codegen_flags: <defaults>
</compile_context>

<pallas_src>
import functools

import jax
import jax.numpy as jnp
from jax.experimental import pallas as pl
from jax.experimental.pallas import tpu as pltpu

BN_EPS = 1e-5
LANE = 128
SUBLANE = 8


def _round_up(n, m):
    return ((n + m - 1) // m) * m


def _batchnorm_train(y, gamma, beta, inv_b):
    # One-pass training-mode BN: the two reductions are independent (shorter
    # critical path than mean-then-(y-mean)^2).
    s1 = jnp.sum(y, axis=0, keepdims=True)
    s2 = jnp.sum(y * y, axis=0, keepdims=True)
    mean = s1 * inv_b
    var = jnp.maximum(s2 * inv_b - mean * mean, 0.0)
    return (y - mean) * jax.lax.rsqrt(var + BN_EPS) * gamma + beta


def _mlp_kernel(feature_dims, offsets, x_ref, w1_ref, ws_ref, bn_ref, out_ref):
    """
    feature_dims : (F_1, ..., F_nl, 6) -- output widths of torch fc1..fc_nl, fc6
    offsets      : slab row offsets of fc2..fc_nl, fc6 inside ws_ref
    x_ref  : (B, 3321) f32          (cast to bf16 in VMEM)
    w1_ref : (3321, F_1) bf16       (dominant DMA, kept at its true width)
    ws_ref : (rows, W) bf16         (fc2..fc_nl packed; fc6 lane-padded to W)
    bn_ref : (2*(nl+1), W) f32      (row 2s = gamma_s, 2s+1 = beta_s, zero-padded)
    out_ref: (B, W) f32 lane-dense  (wrapper slices [:, :6])
    """
    nl = len(feature_dims) - 1
    inv_b = 1.0 / x_ref.shape[0]

    slab = ws_ref[...]
    bn = bn_ref[...]

    h = x_ref[...].astype(jnp.bfloat16)
    z = None
    for s in range(nl):
        fout = feature_dims[s]
        if s == 0:
            w = w1_ref[...]
        else:
            fin = feature_dims[s - 1]
            off = offsets[s - 1]
            w = slab[off:off + fin, :fout]
        y = jnp.dot(h, w, preferred_element_type=jnp.float32)
        g = bn[2 * s:2 * s + 1, :fout]
        b = bn[2 * s + 1:2 * s + 2, :fout]
        z = _batchnorm_train(y, g, b, inv_b)
        # torch carries the *pre-sigmoid* BN output into the next fc layer
        h = z.astype(jnp.bfloat16)

    # branch x_{number_of_layers} = sigmoid(bn_nl) feeds fc6
    branch = jax.nn.sigmoid(z).astype(jnp.bfloat16)
    fin6 = feature_dims[nl - 1]
    off6 = offsets[nl - 1]
    w6 = slab[off6:off6 + fin6, :]          # (fin6, W); columns >= 6 are zero
    y6 = jnp.dot(branch, w6, preferred_element_type=jnp.float32)
    g6 = bn[2 * nl:2 * nl + 1, :]
    b6 = bn[2 * nl + 1:2 * nl + 2, :]
    out_ref[...] = jax.nn.sigmoid(_batchnorm_train(y6, g6, b6, inv_b))


def make_params(key, in_features, hidden_sizes):
    """Xavier-normal Linear weights stored as (in, out) f32; BN gamma=1, beta=0
    (fresh module). Linear biases are omitted (cancelled by training-mode BN)."""
    dims = [in_features] + list(hidden_sizes) + [6]
    keys = jax.random.split(key, len(dims) - 1)
    layers = []
    for k, (fin, fout) in zip(keys, zip(dims[:-1], dims[1:])):
        std = (2.0 / (fin + fout)) ** 0.5  # xavier normal, gain=1
        w = jax.random.normal(k, (fin, fout), dtype=jnp.float32) * std
        layers.append(dict(
            w=w,
            gamma=jnp.ones((fout,), jnp.float32),
            beta=jnp.zeros((fout,), jnp.float32),
        ))
    return layers


def prepare_model(layers, number_of_layers):
    """One-time constant prep: prune dead layers, cast weights to bf16, pack the
    small weights into one lane-padded slab and BN params into one f32 slab."""
    nl = number_of_layers
    assert 1 <= nl <= 5, "number_of_layers must select x_1..x_5"
    active = list(layers[:nl]) + [layers[-1]]                 # fc1..fc_nl, fc6
    feature_dims = tuple(int(l["w"].shape[1]) for l in active[:-1]) + (6,)

    # Common lane-padded width for the small-weight slab, BN rows and the output.
    W = _round_up(max(list(feature_dims[:-1]) + [6, LANE]), LANE)

    w1 = active[0]["w"].astype(jnp.bfloat16)                  # (3321, F_1), true width

    blocks = [active[s]["w"] for s in range(1, nl)] + [active[-1]["w"]]
    offsets, row = [], 0
    for wb in blocks:
        offsets.append(row)
        row += _round_up(int(wb.shape[0]), SUBLANE)
    total_rows = max(_round_up(row, SUBLANE), SUBLANE)
    slab = jnp.zeros((total_rows, W), jnp.bfloat16)
    for off, wb in zip(offsets, blocks):
        fin, fout = int(wb.shape[0]), int(wb.shape[1])
        slab = slab.at[off:off + fin, :fout].set(wb.astype(jnp.bfloat16))

    bn = jnp.zeros((2 * (nl + 1), W), jnp.float32)
    for s, l in enumerate(active):
        fout = int(l["gamma"].shape[0])
        bn = bn.at[2 * s, :fout].set(l["gamma"])
        bn = bn.at[2 * s + 1, :fout].set(l["beta"])

    return w1, slab, bn, feature_dims, tuple(offsets), W


def build_forward(layers, number_of_layers):
    """Returns a jitted forward(x) with all constant prep done once up-front."""
    w1, slab, bn, feature_dims, offsets, W = prepare_model(layers, number_of_layers)
    kernel = functools.partial(_mlp_kernel, feature_dims, offsets)
    vmem = pl.BlockSpec(memory_space=pltpu.MemorySpace.VMEM)
    kin = int(w1.shape[0])
    nl = len(feature_dims) - 1

    @jax.jit
    def _run(x, w1_, slab_, bn_):
        batch = x.shape[0]
        flops = 2 * batch * (kin * feature_dims[0]
                             + sum(feature_dims[s - 1] * feature_dims[s]
                                   for s in range(1, nl))
                             + feature_dims[nl - 1] * W)
        transcendentals = batch * (feature_dims[nl - 1] + W) + 2 * sum(feature_dims)
        bytes_accessed = (x.size * 4 + w1_.size * 2 + slab_.size * 2
                          + bn_.size * 4 + batch * W * 4)
        out = pl.pallas_call(
            kernel,
            out_shape=jax.ShapeDtypeStruct((batch, W), jnp.float32),
            in_specs=[vmem, vmem, vmem, vmem],
            out_specs=vmem,
            cost_estimate=pl.CostEstimate(
                flops=int(flops),
                transcendentals=int(transcendentals),
                bytes_accessed=int(bytes_accessed)),
        )(x, w1_, slab_, bn_)
        return out[:, :6]

    def forward(x):
        assert x.ndim == 2 and x.shape[1] == kin
        assert x.shape[0] >= 2, "training-mode BatchNorm needs batch >= 2"
        return _run(x, w1, slab, bn)

    return forward


def _reference_forward(x, layers, number_of_layers):
    """Pure-JAX reference with identical bf16 matmul feeds, two-pass BN in f32."""
    active = list(layers[:number_of_layers]) + [layers[-1]]
    h = x.astype(jnp.bfloat16)
    z = None
    for l in active[:-1]:
        y = jnp.dot(h, l["w"].astype(jnp.bfloat16), preferred_element_type=jnp.float32)
        mean = jnp.mean(y, axis=0, keepdims=True)
        var = jnp.mean((y - mean) ** 2, axis=0, keepdims=True)
        z = (y - mean) * jax.lax.rsqrt(var + BN_EPS) * l["gamma"][None, :] + l["beta"][None, :]
        h = z.astype(jnp.bfloat16)
    branch = jax.nn.sigmoid(z).astype(jnp.bfloat16)
    l6 = active[-1]
    y6 = jnp.dot(branch, l6["w"].astype(jnp.bfloat16), preferred_element_type=jnp.float32)
    mean = jnp.mean(y6, axis=0, keepdims=True)
    var = jnp.mean((y6 - mean) ** 2, axis=0, keepdims=True)
    bn6 = (y6 - mean) * jax.lax.rsqrt(var + BN_EPS) * l6["gamma"][None, :] + l6["beta"][None, :]
    return jax.nn.sigmoid(bn6)


if __name__ == "__main__":
    key = jax.random.PRNGKey(0)
    kx, kp = jax.random.split(key)

    # in_features=3321 is fixed by the module; hidden widths / branch are module args.
    batch = 32
    in_features = 3321
    hidden = (64, 64, 64, 64, 64)   # out_features1..5
    number_of_layers = 3            # which sigmoid branch feeds fc6

    x = jax.random.normal(kx, (batch, in_features), dtype=jnp.float32)
    layers = make_params(kp, in_features, hidden)

    forward = build_forward(layers, number_of_layers)   # one-time prep + jit
    out = jax.block_until_ready(forward(x))
    out = jax.block_until_ready(forward(x))             # steady-state path: no retrace/prep

    assert out.shape == (batch, 6)
    assert bool(jnp.all(jnp.isfinite(out)))

    ref = jax.block_until_ready(_reference_forward(x, layers, number_of_layers))
    assert float(jnp.max(jnp.abs(out - ref))) < 5e-3

    print("KERNEL_OK")
</pallas_src>

<mosaic_0001>
module attributes {stable_mosaic.version = 11 : i64} {
  func.func @_mlp_kernel(%arg0: memref<32x3321xf32, #tpu.memory_space<vmem>>, %arg1: memref<3321x64xbf16, #tpu.memory_space<vmem>>, %arg2: memref<192x128xbf16, #tpu.memory_space<vmem>>, %arg3: memref<8x128xf32, #tpu.memory_space<vmem>>, %arg4: memref<32x128xf32, #tpu.memory_space<vmem>>) attributes {dimension_semantics = [], scalar_prefetch = 0 : i64, scratch_operands = 0 : i64, tpu.core_type = #tpu.core_type<tc>} {
    %c0 = arith.constant 0 : index
    %c0_0 = arith.constant 0 : index
    %0 = vector.load %arg2[%c0, %c0_0] : memref<192x128xbf16, #tpu.memory_space<vmem>>, vector<192x128xbf16>
    %c0_1 = arith.constant 0 : index
    %c0_2 = arith.constant 0 : index
    %1 = vector.load %arg3[%c0_1, %c0_2] : memref<8x128xf32, #tpu.memory_space<vmem>>, vector<8x128xf32>
    %c0_3 = arith.constant 0 : index
    %c0_4 = arith.constant 0 : index
    %2 = vector.load %arg0[%c0_3, %c0_4] : memref<32x3321xf32, #tpu.memory_space<vmem>>, vector<32x3321xf32>
    %3 = arith.truncf %2 : vector<32x3321xf32> to vector<32x3321xbf16>
    %c0_5 = arith.constant 0 : index
    %c0_6 = arith.constant 0 : index
    %4 = vector.load %arg1[%c0_5, %c0_6] : memref<3321x64xbf16, #tpu.memory_space<vmem>>, vector<3321x64xbf16>
    %cst = arith.constant dense<0.000000e+00> : vector<32x64xf32>
    %5 = tpu.matmul %3, %4, %cst {dimension_numbers = #tpu.dot_dimension_numbers<[1], [0], [0], [1], [0, 0, 1, 1], [], []>} : vector<32x3321xbf16>, vector<3321x64xbf16>, vector<32x64xf32> -> vector<32x64xf32>
    %6 = vector.extract_strided_slice %1 {offsets = [0, 0], sizes = [1, 64], strides = [1, 1]} : vector<8x128xf32> to vector<1x64xf32>
    %7 = vector.extract_strided_slice %1 {offsets = [1, 0], sizes = [1, 64], strides = [1, 1]} : vector<8x128xf32> to vector<1x64xf32>
    %cst_7 = arith.constant dense<0.000000e+00> : vector<64xf32>
    %8 = vector.multi_reduction <add>, %5, %cst_7 [0] : vector<32x64xf32> to vector<64xf32>
    %9 = vector.shape_cast %8 : vector<64xf32> to vector<1x64xf32>
    %10 = arith.mulf %5, %5 : vector<32x64xf32>
    %cst_8 = arith.constant dense<0.000000e+00> : vector<64xf32>
    %11 = vector.multi_reduction <add>, %10, %cst_8 [0] : vector<32x64xf32> to vector<64xf32>
    %12 = vector.shape_cast %11 : vector<64xf32> to vector<1x64xf32>
    %cst_9 = arith.constant 3.125000e-02 : f32
    %13 = vector.broadcast %cst_9 : f32 to vector<1x64xf32>
    %14 = arith.mulf %9, %13 : vector<1x64xf32>
    %cst_10 = arith.constant 3.125000e-02 : f32
    %15 = vector.broadcast %cst_10 : f32 to vector<1x64xf32>
    %16 = arith.mulf %12, %15 : vector<1x64xf32>
    %17 = arith.mulf %14, %14 : vector<1x64xf32>
    %18 = arith.subf %16, %17 : vector<1x64xf32>
    %cst_11 = arith.constant 0.000000e+00 : f32
    %19 = vector.broadcast %cst_11 : f32 to vector<1x64xf32>
    %20 = arith.maximumf %18, %19 : vector<1x64xf32>
    %21 = vector.broadcast %14 : vector<1x64xf32> to vector<32x64xf32>
    %22 = arith.subf %5, %21 : vector<32x64xf32>
    %cst_12 = arith.constant 9.99999974E-6 : f32
    %23 = vector.broadcast %cst_12 : f32 to vector<1x64xf32>
    %24 = arith.addf %20, %23 : vector<1x64xf32>
    %25 = math.rsqrt %24 : vector<1x64xf32>
    %26 = vector.broadcast %25 : vector<1x64xf32> to vector<32x64xf32>
    %27 = arith.mulf %22, %26 : vector<32x64xf32>
    %28 = vector.broadcast %6 : vector<1x64xf32> to vector<32x64xf32>
    %29 = arith.mulf %27, %28 : vector<32x64xf32>
    %30 = vector.broadcast %7 : vector<1x64xf32> to vector<32x64xf32>
    %31 = arith.addf %29, %30 : vector<32x64xf32>
    %32 = arith.truncf %31 : vector<32x64xf32> to vector<32x64xbf16>
    %33 = vector.extract_strided_slice %0 {offsets = [0, 0], sizes = [64, 64], strides = [1, 1]} : vector<192x128xbf16> to vector<64x64xbf16>
    %cst_13 = arith.constant dense<0.000000e+00> : vector<32x64xf32>
    %34 = tpu.matmul %32, %33, %cst_13 {dimension_numbers = #tpu.dot_dimension_numbers<[1], [0], [0], [1], [0, 0, 1, 1], [], []>} : vector<32x64xbf16>, vector<64x64xbf16>, vector<32x64xf32> -> vector<32x64xf32>
    %35 = vector.extract_strided_slice %1 {offsets = [2, 0], sizes = [1, 64], strides = [1, 1]} : vector<8x128xf32> to vector<1x64xf32>
    %36 = vector.extract_strided_slice %1 {offsets = [3, 0], sizes = [1, 64], strides = [1, 1]} : vector<8x128xf32> to vector<1x64xf32>
    %cst_14 = arith.constant dense<0.000000e+00> : vector<64xf32>
    %37 = vector.multi_reduction <add>, %34, %cst_14 [0] : vector<32x64xf32> to vector<64xf32>
    %38 = vector.shape_cast %37 : vector<64xf32> to vector<1x64xf32>
    %39 = arith.mulf %34, %34 : vector<32x64xf32>
    %cst_15 = arith.constant dense<0.000000e+00> : vector<64xf32>
    %40 = vector.multi_reduction <add>, %39, %cst_15 [0] : vector<32x64xf32> to vector<64xf32>
    %41 = vector.shape_cast %40 : vector<64xf32> to vector<1x64xf32>
    %cst_16 = arith.constant 3.125000e-02 : f32
    %42 = vector.broadcast %cst_16 : f32 to vector<1x64xf32>
    %43 = arith.mulf %38, %42 : vector<1x64xf32>
    %cst_17 = arith.constant 3.125000e-02 : f32
    %44 = vector.broadcast %cst_17 : f32 to vector<1x64xf32>
    %45 = arith.mulf %41, %44 : vector<1x64xf32>
    %46 = arith.mulf %43, %43 : vector<1x64xf32>
    %47 = arith.subf %45, %46 : vector<1x64xf32>
    %cst_18 = arith.constant 0.000000e+00 : f32
    %48 = vector.broadcast %cst_18 : f32 to vector<1x64xf32>
    %49 = arith.maximumf %47, %48 : vector<1x64xf32>
    %50 = vector.broadcast %43 : vector<1x64xf32> to vector<32x64xf32>
    %51 = arith.subf %34, %50 : vector<32x64xf32>
    %cst_19 = arith.constant 9.99999974E-6 : f32
    %52 = vector.broadcast %cst_19 : f32 to vector<1x64xf32>
    %53 = arith.addf %49, %52 : vector<1x64xf32>
    %54 = math.rsqrt %53 : vector<1x64xf32>
    %55 = vector.broadcast %54 : vector<1x64xf32> to vector<32x64xf32>
    %56 = arith.mulf %51, %55 : vector<32x64xf32>
    %57 = vector.broadcast %35 : vector<1x64xf32> to vector<32x64xf32>
    %58 = arith.mulf %56, %57 : vector<32x64xf32>
    %59 = vector.broadcast %36 : vector<1x64xf32> to vector<32x64xf32>
    %60 = arith.addf %58, %59 : vector<32x64xf32>
    %61 = arith.truncf %60 : vector<32x64xf32> to vector<32x64xbf16>
    %62 = vector.extract_strided_slice %0 {offsets = [64, 0], sizes = [64, 64], strides = [1, 1]} : vector<192x128xbf16> to vector<64x64xbf16>
    %cst_20 = arith.constant dense<0.000000e+00> : vector<32x64xf32>
    %63 = tpu.matmul %61, %62, %cst_20 {dimension_numbers = #tpu.dot_dimension_numbers<[1], [0], [0], [1], [0, 0, 1, 1], [], []>} : vector<32x64xbf16>, vector<64x64xbf16>, vector<32x64xf32> -> vector<32x64xf32>
    %64 = vector.extract_strided_slice %1 {offsets = [4, 0], sizes = [1, 64], strides = [1, 1]} : vector<8x128xf32> to vector<1x64xf32>
    %65 = vector.extract_strided_slice %1 {offsets = [5, 0], sizes = [1, 64], strides = [1, 1]} : vector<8x128xf32> to vector<1x64xf32>
    %cst_21 = arith.constant dense<0.000000e+00> : vector<64xf32>
    %66 = vector.multi_reduction <add>, %63, %cst_21 [0] : vector<32x64xf32> to vector<64xf32>
    %67 = vector.shape_cast %66 : vector<64xf32> to vector<1x64xf32>
    %68 = arith.mulf %63, %63 : vector<32x64xf32>
    %cst_22 = arith.constant dense<0.000000e+00> : vector<64xf32>
    %69 = vector.multi_reduction <add>, %68, %cst_22 [0] : vector<32x64xf32> to vector<64xf32>
    %70 = vector.shape_cast %69 : vector<64xf32> to vector<1x64xf32>
    %cst_23 = arith.constant 3.125000e-02 : f32
    %71 = vector.broadcast %cst_23 : f32 to vector<1x64xf32>
    %72 = arith.mulf %67, %71 : vector<1x64xf32>
    %cst_24 = arith.constant 3.125000e-02 : f32
    %73 = vector.broadcast %cst_24 : f32 to vector<1x64xf32>
    %74 = arith.mulf %70, %73 : vector<1x64xf32>
    %75 = arith.mulf %72, %72 : vector<1x64xf32>
    %76 = arith.subf %74, %75 : vector<1x64xf32>
    %cst_25 = arith.constant 0.000000e+00 : f32
    %77 = vector.broadcast %cst_25 : f32 to vector<1x64xf32>
    %78 = arith.maximumf %76, %77 : vector<1x64xf32>
    %79 = vector.broadcast %72 : vector<1x64xf32> to vector<32x64xf32>
    %80 = arith.subf %63, %79 : vector<32x64xf32>
    %cst_26 = arith.constant 9.99999974E-6 : f32
    %81 = vector.broadcast %cst_26 : f32 to vector<1x64xf32>
    %82 = arith.addf %78, %81 : vector<1x64xf32>
    %83 = math.rsqrt %82 : vector<1x64xf32>
    %84 = vector.broadcast %83 : vector<1x64xf32> to vector<32x64xf32>
    %85 = arith.mulf %80, %84 : vector<32x64xf32>
    %86 = vector.broadcast %64 : vector<1x64xf32> to vector<32x64xf32>
    %87 = arith.mulf %85, %86 : vector<32x64xf32>
    %88 = vector.broadcast %65 : vector<1x64xf32> to vector<32x64xf32>
    %89 = arith.addf %87, %88 : vector<32x64xf32>
    %90 = arith.negf %89 : vector<32x64xf32>
    %91 = math.exp %90 : vector<32x64xf32>
    %cst_27 = arith.constant 1.000000e+00 : f32
    %92 = vector.broadcast %cst_27 : f32 to vector<32x64xf32>
    %93 = arith.addf %92, %91 : vector<32x64xf32>
    %94 = arith.divf %92, %93 : vector<32x64xf32>
    %95 = arith.truncf %94 : vector<32x64xf32> to vector<32x64xbf16>
    %96 = vector.extract_strided_slice %0 {offsets = [128, 0], sizes = [64, 128], strides = [1, 1]} : vector<192x128xbf16> to vector<64x128xbf16>
    %cst_28 = arith.constant dense<0.000000e+00> : vector<32x128xf32>
    %97 = tpu.matmul %95, %96, %cst_28 {dimension_numbers = #tpu.dot_dimension_numbers<[1], [0], [0], [1], [0, 0, 1, 1], [], []>} : vector<32x64xbf16>, vector<64x128xbf16>, vector<32x128xf32> -> vector<32x128xf32>
    %98 = vector.extract_strided_slice %1 {offsets = [6, 0], sizes = [1, 128], strides = [1, 1]} : vector<8x128xf32> to vector<1x128xf32>
    %99 = vector.extract_strided_slice %1 {offsets = [7, 0], sizes = [1, 128], strides = [1, 1]} : vector<8x128xf32> to vector<1x128xf32>
    %cst_29 = arith.constant dense<0.000000e+00> : vector<128xf32>
    %100 = vector.multi_reduction <add>, %97, %cst_29 [0] : vector<32x128xf32> to vector<128xf32>
    %101 = vector.shape_cast %100 : vector<128xf32> to vector<1x128xf32>
    %102 = arith.mulf %97, %97 : vector<32x128xf32>
    %cst_30 = arith.constant dense<0.000000e+00> : vector<128xf32>
    %103 = vector.multi_reduction <add>, %102, %cst_30 [0] : vector<32x128xf32> to vector<128xf32>
    %104 = vector.shape_cast %103 : vector<128xf32> to vector<1x128xf32>
    %cst_31 = arith.constant 3.125000e-02 : f32
    %105 = vector.broadcast %cst_31 : f32 to vector<1x128xf32>
    %106 = arith.mulf %101, %105 : vector<1x128xf32>
    %cst_32 = arith.constant 3.125000e-02 : f32
    %107 = vector.broadcast %cst_32 : f32 to vector<1x128xf32>
    %108 = arith.mulf %104, %107 : vector<1x128xf32>
    %109 = arith.mulf %106, %106 : vector<1x128xf32>
    %110 = arith.subf %108, %109 : vector<1x128xf32>
    %cst_33 = arith.constant 0.000000e+00 : f32
    %111 = vector.broadcast %cst_33 : f32 to vector<1x128xf32>
    %112 = arith.maximumf %110, %111 : vector<1x128xf32>
    %113 = vector.broadcast %106 : vector<1x128xf32> to vector<32x128xf32>
    %114 = arith.subf %97, %113 : vector<32x128xf32>
    %cst_34 = arith.constant 9.99999974E-6 : f32
    %115 = vector.broadcast %cst_34 : f32 to vector<1x128xf32>
    %116 = arith.addf %112, %115 : vector<1x128xf32>
    %117 = math.rsqrt %116 : vector<1x128xf32>
    %118 = vector.broadcast %117 : vector<1x128xf32> to vector<32x128xf32>
    %119 = arith.mulf %114, %118 : vector<32x128xf32>
    %120 = vector.broadcast %98 : vector<1x128xf32> to vector<32x128xf32>
    %121 = arith.mulf %119, %120 : vector<32x128xf32>
    %122 = vector.broadcast %99 : vector<1x128xf32> to vector<32x128xf32>
    %123 = arith.addf %121, %122 : vector<32x128xf32>
    %124 = arith.negf %123 : vector<32x128xf32>
    %125 = math.exp %124 : vector<32x128xf32>
    %cst_35 = arith.constant 1.000000e+00 : f32
    %126 = vector.broadcast %cst_35 : f32 to vector<32x128xf32>
    %127 = arith.addf %126, %125 : vector<32x128xf32>
    %128 = arith.divf %126, %127 : vector<32x128xf32>
    %c0_36 = arith.constant 0 : index
    %c0_37 = arith.constant 0 : index
    %129 = vector.load %arg4[%c0_36, %c0_37] : memref<32x128xf32, #tpu.memory_space<vmem>>, vector<32x128xf32>
    tpu.vector_store %arg4[%c0_36, %c0_37], %128 {strides = array<i32>} : memref<32x128xf32, #tpu.memory_space<vmem>>, vector<32x128xf32>,
    return
  }
}

</mosaic_0001>

<bundles_post_ra>
// kernel: _run.1
= control target key start
LH: loop header
LB: loop body
LE: loop exit
PB: predicated region body
PF: predicated region fallthrough
CT: control target
= control target key end

     0   :  { %vm1869_vm0 = vcmask 1043456   ;;  %vm1870_vm1 = vcmask 1044480   ;;  %vm1862_vm2 = vcmask 990208   ;;  %vm2513_vm3 = vcmask 523264   ;;  %s5215_s1 = inlined_call_operand.vmem [shape: bf16[3321,64], index: 1, kind: input, shape index: {}]   ;;  %s5216_s0 = inlined_call_operand.vmem [shape: f32[32,3321], index: 0, kind: input, shape index: {}]   ;;  %s5217_s2 = inlined_call_operand.vmem [shape: bf16[192,128], index: 2, kind: input, shape index: {}]   ;;  %s5218_s3 = inlined_call_operand.vmem [shape: f32[8,128], index: 3, kind: input, shape index: {}]   ;;  %s5219_s4 = inlined_call_operand.vmem [shape: f32[32,128], index: 4, kind: output, shape index: {}]  }
   0x1   :  { %v3704_v0 = vld [vmem:[%s5215_s1 + $0x78] sm:$0xff]   ;;  %v3708_v4 = vld [vmem:[%s5215_s1 + $0x70] sm:$0xff]   ;;  %v3712_v8 = vld [vmem:[%s5215_s1 + $0x68] sm:$0xff]  }
   0x2   :  { %v3705_v1 = vld [vmem:[%s5215_s1 + $0xf8] sm:$0xff]   ;;  %3285 = vmatprep.subr.bf16.mxu0 %v3704_v0  ;;  %v3709_v5 = vld [vmem:[%s5215_s1 + $0xf0] sm:$0xff]   ;;  %v3713_v9 = vld [vmem:[%s5215_s1 + $0xe8] sm:$0xff]  }
   0x3   :  { %v3706_v2 = vld [vmem:[%s5215_s1 + $0x38] sm:$0xff]   ;;  %3313 = vmatprep.subr.bf16.mxu1 %v3705_v1  ;;  %v3710_v6 = vld [vmem:[%s5215_s1 + $0x30] sm:$0xff]   ;;  %v3714_v10 = vld [vmem:[%s5215_s1 + $0x28] sm:$0xff]  }
   0x4   :  { %v3707_v3 = vld [vmem:[%s5215_s1 + $0xb8] sm:$0xff]   ;;  %3286 = vmatpush3.bf16.msra.mxu0 %v3706_v2  ;;  %v3711_v7 = vld [vmem:[%s5215_s1 + $0xb0] sm:$0xff]   ;;  %v3715_v11 = vld [vmem:[%s5215_s1 + $0xa8] sm:$0xff]  }
   0x5   :  { %3314 = vmatpush3.bf16.msra.mxu1 %v3707_v3  ;;  %3287 = vmatprep.subr.bf16.mxu0 %v3708_v4  ;;  %v3716_v12 = vld [vmem:[%s5215_s1 + $0x60] sm:$0xff]   ;;  %v3720_v16 = vld [vmem:[%s5215_s1 + $0x58] sm:$0xff]   ;;  %v3724_v20 = vld [vmem:[%s5215_s1 + $0x50] sm:$0xff]  }
   0x6   :  { %3315 = vmatprep.subr.bf16.mxu1 %v3709_v5  ;;  %v3717_v13 = vld [vmem:[%s5215_s1 + $0xe0] sm:$0xff]   ;;  %v3721_v17 = vld [vmem:[%s5215_s1 + $0xd8] sm:$0xff]   ;;  %v3725_v21 = vld [vmem:[%s5215_s1 + $0xd0] sm:$0xff]  }
   0x7   :  { %v3718_v14 = vld [vmem:[%s5215_s1 + $0x20] sm:$0xff]   ;;  %v3722_v18 = vld [vmem:[%s5215_s1 + $0x18] sm:$0xff]   ;;  %v3726_v22 = vld [vmem:[%s5215_s1 + $0x10] sm:$0xff]  }
   0x8   :  { %3288 = vmatpush3.bf16.msra.mxu0 %v3710_v6  ;;  %v3719_v15 = vld [vmem:[%s5215_s1 + $0xa0] sm:$0xff]   ;;  %v3723_v19 = vld [vmem:[%s5215_s1 + $0x98] sm:$0xff]   ;;  %v3727_v23 = vld [vmem:[%s5215_s1 + $0x90] sm:$0xff]  }
   0x9   :  { %3316 = vmatpush3.bf16.msra.mxu1 %v3711_v7  ;;  %3289 = vmatprep.subr.bf16.mxu0 %v3712_v8  ;;  %v3728_v24 = vld [vmem:[%s5215_s1 + $0x48] sm:$0xff]   ;;  %v3732_v28 = vld [vmem:[%s5215_s1 + $0x40] sm:$0xff]   ;;  %v70_v33 = vld [vmem:[%s5216_s0 + $0xd8] sm:$0xff] }
   0xa   :  { %3317 = vmatprep.subr.bf16.mxu1 %v3713_v9  ;;  %v3729_v25 = vld [vmem:[%s5215_s1 + $0xc8] sm:$0xff]   ;;  %v3733_v29 = vld [vmem:[%s5215_s1 + $0xc0] sm:$0xff]   ;;  %v46_v34 = vld [vmem:[%s5216_s0 + $0x18] sm:$0xff] }
   0xb   :  { %v3730_v26 = vld [vmem:[%s5215_s1 + $0x8] sm:$0xff]   ;;  %v3734_v30 = vld [vmem:[%s5215_s1] sm:$0xff]   ;;  %v69_v38 = vld [vmem:[%s5216_s0 + $0xd0] sm:$0xff] }
   0xc   :  { %3290 = vmatpush3.bf16.msra.mxu0 %v3714_v10  ;;  %v3731_v27 = vld [vmem:[%s5215_s1 + $0x88] sm:$0xff]   ;;  %v3735_v31 = vld [vmem:[%s5215_s1 + $0x80] sm:$0xff]   ;;  %v45_v41 = vld [vmem:[%s5216_s0 + $0x10] sm:$0xff] }
   0xd   :  { %3318 = vmatpush3.bf16.msra.mxu1 %v3715_v11  ;;  %3291 = vmatprep.subr.bf16.mxu0 %v3716_v12  ;;  %v44_v32 = vld [vmem:[%s5216_s0 + $0x8] sm:$0xff]  ;;  %v43_v37 = vld [vmem:[%s5216_s0] sm:$0xff]  ;;  %v3736_v44 = vld [vmem:[%s5215_s1 + $0x178] sm:$0xff]  }
   0xe   :  { %3319 = vmatprep.subr.bf16.mxu1 %v3717_v13  ;;  %v148_v35 = vpack.c.bf16 %v70_v33, %v44_v32  ;;  %v72_v36 = vld [vmem:[%s5216_s0 + $0xe8] sm:$0xff]  ;;  %v147_v40 = vpack.c.bf16 %v69_v38, %v43_v37  ;;  %v71_v42 = vld [vmem:[%s5216_s0 + $0xe0] sm:$0xff]  ;;  %v3737_v45 = vld [vmem:[%s5215_s1 + $0x138] sm:$0xff]  }
   0xf   :  { %v150_v39 = vpack.c.bf16 %v72_v36, %v46_v34  ;;  %v149_v43 = vpack.c.bf16 %v71_v42, %v45_v41  ;;  %v3738_v46 = vld [vmem:[%s5215_s1 + $0x1f8] sm:$0xff]   ;;  %v3740_v48 = vld [vmem:[%s5215_s1 + $0x170] sm:$0xff]   ;;  %v3744_v52 = vld [vmem:[%s5215_s1 + $0x168] sm:$0xff]  }
  0x10   :  { %3292 = vmatpush3.bf16.msra.mxu0 %v3718_v14  ;;  %1908 = vmatprep.mubr.bf16.mxu0 %v148_v35  ;;  %v3739_v47 = vld [vmem:[%s5215_s1 + $0x1b8] sm:$0xff]   ;;  %v3741_v49 = vld [vmem:[%s5215_s1 + $0x130] sm:$0xff]   ;;  %v3745_v53 = vld [vmem:[%s5215_s1 + $0x128] sm:$0xff]  }
  0x11   :  { %3320 = vmatpush3.bf16.msra.mxu1 %v3719_v15  ;;  %3293 = vmatprep.subr.bf16.mxu0 %v3720_v16  ;;  %v3742_v50 = vld [vmem:[%s5215_s1 + $0x1f0] sm:$0xff]   ;;  %v3746_v54 = vld [vmem:[%s5215_s1 + $0x1e8] sm:$0xff]   ;;  %v3748_v56 = vld [vmem:[%s5215_s1 + $0x160] sm:$0xff]  }
  0x12   :  { %3321 = vmatprep.subr.bf16.mxu1 %v3721_v17  ;;  %1957 = vmatprep.mubr.bf16.mxu1 %v150_v39  ;;  %v3743_v51 = vld [vmem:[%s5215_s1 + $0x1b0] sm:$0xff]   ;;  %v3747_v55 = vld [vmem:[%s5215_s1 + $0x1a8] sm:$0xff]   ;;  %v3749_v57 = vld [vmem:[%s5215_s1 + $0x120] sm:$0xff]  }
  0x13   :  { %v3750_v58 = vld [vmem:[%s5215_s1 + $0x1e0] sm:$0xff]   ;;  %v3752_v60 = vld [vmem:[%s5215_s1 + $0x158] sm:$0xff]   ;;  %v96_v62 = vld [vmem:[%s5216_s0 + $0x1a8] sm:$0xff] }
  0x14   :  { %3294 = vmatpush3.bf16.msra.mxu0 %v3722_v18  ;;  %v3751_v59 = vld [vmem:[%s5215_s1 + $0x1a0] sm:$0xff]   ;;  %v3753_v61 = vld [vmem:[%s5215_s1 + $0x118] sm:$0xff]   ;;  %v124_v1 = vld [vmem:[%s5216_s0 + $0x288] sm:$0xff] }
  0x15   :  { %3322 = vmatpush3.bf16.msra.mxu1 %v3723_v19  ;;  %3295 = vmatprep.subr.bf16.mxu0 %v3724_v20  ;;  %v122_v63 = vld [vmem:[%s5216_s0 + $0x278] sm:$0xff]  ;;  %v95_v5 = vld [vmem:[%s5216_s0 + $0x1a0] sm:$0xff]  ;;  %v121_v6 = vld [vmem:[%s5216_s0 + $0x270] sm:$0xff] }
  0x16   :  { %3323 = vmatprep.subr.bf16.mxu1 %v3725_v21  ;;  %v98_v0 = vld [vmem:[%s5216_s0 + $0x1b8] sm:$0xff]  ;;  %v174_v2 = vpack.c.bf16 %v122_v63, %v96_v62  ;;  %v97_v7 = vld [vmem:[%s5216_s0 + $0x1b0] sm:$0xff]  ;;  %v173_v8 = vpack.c.bf16 %v121_v6, %v95_v5  ;;  %v123_v9 = vld [vmem:[%s5216_s0 + $0x280] sm:$0xff] }
  0x17   :  { %v176_v3 = vpack.c.bf16 %v124_v1, %v98_v0  ;;  %v3754_v4 = vld [vmem:[%s5215_s1 + $0x1d8] sm:$0xff]   ;;  %v175_v10 = vpack.c.bf16 %v123_v9, %v97_v7  ;;  %v3756_v12 = vld [vmem:[%s5215_s1 + $0x150] sm:$0xff]   ;;  %v3760_v16 = vld [vmem:[%s5215_s1 + $0x148] sm:$0xff]  }
  0x18   :  { %3296 = vmatpush3.bf16.msra.mxu0 %v3726_v22  ;;  %v3755_v11 = vld [vmem:[%s5215_s1 + $0x198] sm:$0xff]   ;;  %v3757_v13 = vld [vmem:[%s5215_s1 + $0x110] sm:$0xff]   ;;  %v3761_v17 = vld [vmem:[%s5215_s1 + $0x108] sm:$0xff]  }
  0x19   :  { %3324 = vmatpush3.bf16.msra.mxu1 %v3727_v23  ;;  %3297 = vmatprep.subr.bf16.mxu0 %v3728_v24  ;;  %v3758_v14 = vld [vmem:[%s5215_s1 + $0x1d0] sm:$0xff]   ;;  %v3762_v18 = vld [vmem:[%s5215_s1 + $0x1c8] sm:$0xff]   ;;  %v3764_v20 = vld [vmem:[%s5215_s1 + $0x140] sm:$0xff]  }
  0x1a   :  { %3325 = vmatprep.subr.bf16.mxu1 %v3729_v25  ;;  %v3759_v15 = vld [vmem:[%s5215_s1 + $0x190] sm:$0xff]   ;;  %v3763_v19 = vld [vmem:[%s5215_s1 + $0x188] sm:$0xff]   ;;  %v3765_v21 = vld [vmem:[%s5215_s1 + $0x100] sm:$0xff]  }
  0x1b   :  { %v3766_v22 = vld [vmem:[%s5215_s1 + $0x1c0] sm:$0xff]   ;;  %v48_v23 = vld [vmem:[%s5216_s0 + $0x28] sm:$0xff]  ;;  %v74_v24 = vld [vmem:[%s5216_s0 + $0xf8] sm:$0xff] }
  0x1c   :  { %3298 = vmatpush3.bf16.msra.mxu0 %v3730_v26  ;;  %v152_v25 = vpack.c.bf16 %v74_v24, %v48_v23  ;;  %v3767_v26 = vld [vmem:[%s5215_s1 + $0x180] sm:$0xff]   ;;  %v76_v32 = vld [vmem:[%s5216_s0 + $0x108] sm:$0xff]  ;;  %v3769_v34 = vld [vmem:[%s5215_s1 + $0x238] sm:$0xff]  }
  0x1d   :  { %3326 = vmatpush3.bf16.msra.mxu1 %v3731_v27  ;;  %3299 = vmatprep.subr.bf16.mxu0 %v3732_v28  ;;  %v47_v27 = vld [vmem:[%s5216_s0 + $0x20] sm:$0xff]  ;;  %v73_v28 = vld [vmem:[%s5216_s0 + $0xf0] sm:$0xff]  ;;  %v3770_v38 = vld [vmem:[%s5215_s1 + $0x2f8] sm:$0xff]  }
  0x1e   :  { %3327 = vmatprep.subr.bf16.mxu1 %v3733_v29  ;;  %v151_v29 = vpack.c.bf16 %v73_v28, %v47_v27  ;;  %v49_v35 = vld [vmem:[%s5216_s0 + $0x30] sm:$0xff]  ;;  %v75_v36 = vld [vmem:[%s5216_s0 + $0x100] sm:$0xff]  ;;  %v3771_v39 = vld [vmem:[%s5215_s1 + $0x2b8] sm:$0xff]  }
  0x1f   :  { %v153_v37 = vpack.c.bf16 %v75_v36, %v49_v35  ;;  %v3773_v41 = vld [vmem:[%s5215_s1 + $0x230] sm:$0xff]   ;;  %v3782_v62 = vld [vmem:[%s5215_s1 + $0x2e0] sm:$0xff]   ;;  %v3784_v0 = vld [vmem:[%s5215_s1 + $0x258] sm:$0xff]  }
  0x20   :  { %3300 = vmatpush3.bf16.msra.mxu0 %v3734_v30  ;;  %v3768_v30 = vld [vmem:[%s5215_s1 + $0x278] sm:$0xff]   ;;  %v3774_v42 = vld [vmem:[%s5215_s1 + $0x2f0] sm:$0xff]   ;;  %v3783_v63 = vld [vmem:[%s5215_s1 + $0x2a0] sm:$0xff]  }
  0x21   :  { %3328 = vmatpush3.bf16.msra.mxu1 %v3735_v31  ;;  %3341 = vmatprep.subr.bf16.mxu0 %v3736_v44  ;;  %v50_v31 = vld [vmem:[%s5216_s0 + $0x38] sm:$0xff]  ;;  %v3789_v5 = vld [vmem:[%s5215_s1 + $0x210] sm:$0xff]   ;;  %v3793_v9 = vld [vmem:[%s5215_s1 + $0x208] sm:$0xff]  }
  0x22   :  { %3369 = vmatprep.subr.bf16.mxu1 %v3738_v46  ;;  %v154_v33 = vpack.c.bf16 %v76_v32, %v50_v31  ;;  %v126_v44 = vld [vmem:[%s5216_s0 + $0x298] sm:$0xff]  ;;  %v3775_v46 = vld [vmem:[%s5215_s1 + $0x2b0] sm:$0xff]   ;;  %v80_v24 = vld [vmem:[%s5216_s0 + $0x128] sm:$0xff] }
  0x23   :  { %1909 = vmatmul.mubr.bf16.vlgmr.msra.gmra.mxu0 %v147_v40  ;;  %v3772_v40 = vld [vmem:[%s5215_s1 + $0x270] sm:$0xff]   ;;  %v3785_v1 = vld [vmem:[%s5215_s1 + $0x218] sm:$0xff]   ;;  %v79_v28 = vld [vmem:[%s5216_s0 + $0x120] sm:$0xff] }
  0x24   :  { %1958 = vmatmul.mubr.bf16.vlgmr.msra.gmra.mxu1 %v149_v43  ;;  %3342 = vmatpush3.bf16.msra.mxu0 %v3737_v45  ;;  %v100_v43 = vld [vmem:[%s5216_s0 + $0x1c8] sm:$0xff]  ;;  %v3790_v6 = vld [vmem:[%s5215_s1 + $0x2d0] sm:$0xff]   ;;  %v54_v23 = vld [vmem:[%s5216_s0 + $0x58] sm:$0xff] }
  0x25   :  { %3370 = vmatpush3.bf16.msra.mxu1 %v3739_v47  ;;  %3343 = vmatprep.subr.bf16.mxu0 %v3740_v48  ;;  %v178_v45 = vpack.c.bf16 %v126_v44, %v100_v43  ;;  %v99_v47 = vld [vmem:[%s5216_s0 + $0x1c0] sm:$0xff]  ;;  %v125_v48 = vld [vmem:[%s5216_s0 + $0x290] sm:$0xff]  ;;  %v3803_v31 = vld [vmem:[%s5215_s1 + $0x3b8] sm:$0xff]  }
  0x26   :  { %3371 = vmatprep.subr.bf16.mxu1 %v3742_v50  ;;  %1916 = vmatprep.mubr.bf16.mxu0 %v174_v2  ;;  %v3776_v50 = vld [vmem:[%s5215_s1 + $0x268] sm:$0xff]   ;;  %v3786_v2 = vld [vmem:[%s5215_s1 + $0x2d8] sm:$0xff]   ;;  %v3791_v7 = vld [vmem:[%s5215_s1 + $0x290] sm:$0xff]  }
  0x27   :  { %1965 = vmatprep.mubr.bf16.mxu1 %v176_v3  ;;  %v3787_v3 = vld [vmem:[%s5215_s1 + $0x298] sm:$0xff]   ;;  %v53_v27 = vld [vmem:[%s5216_s0 + $0x50] sm:$0xff]  ;;  %v104_v35 = vld [vmem:[%s5216_s0 + $0x1e8] sm:$0xff] }
  0x28   :  { %3344 = vmatpush3.bf16.msra.mxu0 %v3741_v49  ;;  %v177_v49 = vpack.c.bf16 %v125_v48, %v99_v47  ;;  %v3804_v32 = vld [vmem:[%s5215_s1 + $0x370] sm:$0xff]   ;;  %v130_v36 = vld [vmem:[%s5216_s0 + $0x2b8] sm:$0xff]  ;;  %v132_v44 = vld [vmem:[%s5216_s0 + $0x2c8] sm:$0xff] }
  0x29   :  { %3372 = vmatpush3.bf16.msra.mxu1 %v3743_v51  ;;  %3345 = vmatprep.subr.bf16.mxu0 %v3744_v52  ;;  %v102_v51 = vld [vmem:[%s5216_s0 + $0x1d8] sm:$0xff]  ;;  %v128_v52 = vld [vmem:[%s5216_s0 + $0x2a8] sm:$0xff]  ;;  %v105_v47 = vld [vmem:[%s5216_s0 + $0x1f0] sm:$0xff] }
  0x2a   :  { %3373 = vmatprep.subr.bf16.mxu1 %v3746_v54  ;;  %v3777_v54 = vld [vmem:[%s5215_s1 + $0x228] sm:$0xff]   ;;  %v106_v43 = vld [vmem:[%s5216_s0 + $0x1f8] sm:$0xff]  ;;  %v131_v48 = vld [vmem:[%s5216_s0 + $0x2c0] sm:$0xff] }
  0x2b   :  { %1917 = vmatmul.mubr.bf16.gmra.mxu0 %v173_v8  ;;  %v3792_v8 = vld [vmem:[%s5215_s1 + $0x248] sm:$0xff]  }
  0x2c   :  { %3346 = vmatpush3.bf16.msra.mxu0 %v3745_v53  ;;  %1966 = vmatmul.mubr.bf16.gmra.mxu1 %v175_v10  ;;  %v180_v53 = vpack.c.bf16 %v128_v52, %v102_v51  ;;  %v3794_v10 = vld [vmem:[%s5215_s1 + $0x2c8] sm:$0xff]   ;;  %v3812_v52 = vld [vmem:[%s5215_s1 + $0x360] sm:$0xff]  }
  0x2d   :  { %3374 = vmatpush3.bf16.msra.mxu1 %v3747_v55  ;;  %3347 = vmatprep.subr.bf16.mxu0 %v3748_v56  ;;  %v101_v55 = vld [vmem:[%s5216_s0 + $0x1d0] sm:$0xff]  ;;  %v127_v56 = vld [vmem:[%s5216_s0 + $0x2a0] sm:$0xff]  ;;  %v3811_v51 = vld [vmem:[%s5215_s1 + $0x3a8] sm:$0xff]  }
  0x2e   :  { %3375 = vmatprep.subr.bf16.mxu1 %v3750_v58  ;;  %2006 = vmatprep.mubr.bf16.mxu0 %v152_v25  ;;  %v3778_v58 = vld [vmem:[%s5215_s1 + $0x2e8] sm:$0xff]   ;;  %v158_v25 = vpack.c.bf16 %v80_v24, %v54_v23  ;;  %v3835_v23 = vld [vmem:[%s5215_s1 + $0x4b8] sm:$0xff]   ;;  %v3836_v24 = vld [vmem:[%s5215_s1 + $0x470] sm:$0xff]  }
  0x2f   :  { %2055 = vmatprep.mubr.bf16.mxu1 %v154_v33  ;;  %v3805_v33 = vld [vmem:[%s5215_s1 + $0x330] sm:$0xff]  }
  0x30   :  { %3348 = vmatpush3.bf16.msra.mxu0 %v3749_v57  ;;  %v179_v57 = vpack.c.bf16 %v127_v56, %v101_v55  ;;  %v3815_v55 = vld [vmem:[%s5215_s1 + $0x3a0] sm:$0xff]   ;;  %v3816_v56 = vld [vmem:[%s5215_s1 + $0x358] sm:$0xff]  }
  0x31   :  { %3376 = vmatpush3.bf16.msra.mxu1 %v3751_v59  ;;  %3349 = vmatprep.subr.bf16.mxu0 %v3752_v60  ;;  %v3779_v59 = vld [vmem:[%s5215_s1 + $0x2a8] sm:$0xff]   ;;  %v3780_v60 = vld [vmem:[%s5215_s1 + $0x260] sm:$0xff]  }
  0x32   :  { %3377 = vmatprep.subr.bf16.mxu1 %v3754_v4  ;;  %v3788_v4 = vld [vmem:[%s5215_s1 + $0x250] sm:$0xff]  }
  0x34   :  { %3350 = vmatpush3.bf16.msra.mxu0 %v3753_v61  ;;  %v3781_v61 = vld [vmem:[%s5215_s1 + $0x220] sm:$0xff]  }
  0x35   :  { %3378 = vmatpush3.bf16.msra.mxu1 %v3755_v11  ;;  %3351 = vmatprep.subr.bf16.mxu0 %v3756_v12  ;;  %v3795_v11 = vld [vmem:[%s5215_s1 + $0x288] sm:$0xff]   ;;  %v3796_v12 = vld [vmem:[%s5215_s1 + $0x240] sm:$0xff]  }
  0x36   :  { %3379 = vmatprep.subr.bf16.mxu1 %v3758_v14  ;;  %v3798_v14 = vld [vmem:[%s5215_s1 + $0x2c0] sm:$0xff]  }
  0x38   :  { %3352 = vmatpush3.bf16.msra.mxu0 %v3757_v13  ;;  %v3797_v13 = vld [vmem:[%s5215_s1 + $0x200] sm:$0xff]  }
  0x39   :  { %3380 = vmatpush3.bf16.msra.mxu1 %v3759_v15  ;;  %3353 = vmatprep.subr.bf16.mxu0 %v3760_v16  ;;  %v52_v15 = vld [vmem:[%s5216_s0 + $0x48] sm:$0xff]  ;;  %v78_v16 = vld [vmem:[%s5216_s0 + $0x118] sm:$0xff] }
  0x3a   :  { %3381 = vmatprep.subr.bf16.mxu1 %v3762_v18  ;;  %v3799_v18 = vld [vmem:[%s5215_s1 + $0x280] sm:$0xff]  }
  0x3c   :  { %3354 = vmatpush3.bf16.msra.mxu0 %v3761_v17  ;;  %v156_v17 = vpack.c.bf16 %v78_v16, %v52_v15  ;;  %v58_v15 = vld [vmem:[%s5216_s0 + $0x78] sm:$0xff]  ;;  %v84_v16 = vld [vmem:[%s5216_s0 + $0x148] sm:$0xff] }
  0x3d   :  { %3382 = vmatpush3.bf16.msra.mxu1 %v3763_v19  ;;  %3355 = vmatprep.subr.bf16.mxu0 %v3764_v20  ;;  %v51_v19 = vld [vmem:[%s5216_s0 + $0x40] sm:$0xff]  ;;  %v77_v20 = vld [vmem:[%s5216_s0 + $0x110] sm:$0xff] }
  0x3e   :  { %3383 = vmatprep.subr.bf16.mxu1 %v3766_v22  ;;  %v3800_v22 = vld [vmem:[%s5215_s1 + $0x378] sm:$0xff]  }
  0x40   :  { %3356 = vmatpush3.bf16.msra.mxu0 %v3765_v21  ;;  %v155_v21 = vpack.c.bf16 %v77_v20, %v51_v19  ;;  %v57_v19 = vld [vmem:[%s5216_s0 + $0x70] sm:$0xff]  ;;  %v83_v20 = vld [vmem:[%s5216_s0 + $0x140] sm:$0xff] }
  0x41   :  { %3384 = vmatpush3.bf16.msra.mxu1 %v3767_v26  ;;  %3397 = vmatprep.subr.bf16.mxu0 %v3768_v30  ;;  %v3801_v26 = vld [vmem:[%s5215_s1 + $0x338] sm:$0xff]  }
  0x42   :  { %3425 = vmatprep.subr.bf16.mxu1 %v3770_v38  ;;  %v3802_v30 = vld [vmem:[%s5215_s1 + $0x3f8] sm:$0xff]   ;;  %v3807_v38 = vld [vmem:[%s5215_s1 + $0x3b0] sm:$0xff]  }
  0x43   :  { %2007 = vmatmul.mubr.bf16.vlgmr.msra.gmra.mxu0 %v151_v29  ;;  %v157_v29 = vpack.c.bf16 %v79_v28, %v53_v27  ;;  %v108_v27 = vld [vmem:[%s5216_s0 + $0x208] sm:$0xff]  ;;  %v134_v28 = vld [vmem:[%s5216_s0 + $0x2d8] sm:$0xff] }
  0x44   :  { %3398 = vmatpush3.bf16.msra.mxu0 %v3769_v34  ;;  %2056 = vmatmul.mubr.bf16.vlgmr.msra.gmra.mxu1 %v153_v37  ;;  %v3806_v34 = vld [vmem:[%s5215_s1 + $0x3f0] sm:$0xff]   ;;  %v182_v37 = vpack.c.bf16 %v130_v36, %v104_v35  ;;  %v110_v35 = vld [vmem:[%s5216_s0 + $0x218] sm:$0xff]  ;;  %v136_v36 = vld [vmem:[%s5216_s0 + $0x2e8] sm:$0xff] }
  0x45   :  { %3426 = vmatpush3.bf16.msra.mxu1 %v3771_v39  ;;  %3399 = vmatprep.subr.bf16.mxu0 %v3772_v40  ;;  %v103_v39 = vld [vmem:[%s5216_s0 + $0x1e0] sm:$0xff]  ;;  %v129_v40 = vld [vmem:[%s5216_s0 + $0x2b0] sm:$0xff] }
  0x46   :  { %3427 = vmatprep.subr.bf16.mxu1 %v3774_v42  ;;  %2014 = vmatprep.mubr.bf16.mxu0 %v178_v45  ;;  %v3808_v42 = vld [vmem:[%s5215_s1 + $0x368] sm:$0xff]   ;;  %v184_v45 = vpack.c.bf16 %v132_v44, %v106_v43  ;;  %v3844_v44 = vld [vmem:[%s5215_s1 + $0x460] sm:$0xff]  }
  0x47   :  { %2063 = vmatprep.mubr.bf16.mxu1 %v180_v53  ;;  %v3813_v53 = vld [vmem:[%s5215_s1 + $0x320] sm:$0xff]   ;;  %v3843_v43 = vld [vmem:[%s5215_s1 + $0x4a8] sm:$0xff]  }
  0x48   :  { %3400 = vmatpush3.bf16.msra.mxu0 %v3773_v41  ;;  %v181_v41 = vpack.c.bf16 %v129_v40, %v103_v39  ;;  %v109_v39 = vld [vmem:[%s5216_s0 + $0x210] sm:$0xff]  ;;  %v135_v40 = vld [vmem:[%s5216_s0 + $0x2e0] sm:$0xff] }
  0x49   :  { %3428 = vmatpush3.bf16.msra.mxu1 %v3775_v46  ;;  %3401 = vmatprep.subr.bf16.mxu0 %v3776_v50  ;;  %v3809_v46 = vld [vmem:[%s5215_s1 + $0x328] sm:$0xff]  }
  0x4a   :  { %3429 = vmatprep.subr.bf16.mxu1 %v3778_v58  ;;  %v3810_v50 = vld [vmem:[%s5215_s1 + $0x3e8] sm:$0xff]   ;;  %v3818_v58 = vld [vmem:[%s5215_s1 + $0x3d8] sm:$0xff]  }
  0x4b   :  { %2015 = vmatmul.mubr.bf16.gmra.mxu0 %v177_v49  ;;  %v183_v49 = vpack.c.bf16 %v131_v48, %v105_v47  ;;  %v3847_v47 = vld [vmem:[%s5215_s1 + $0x4a0] sm:$0xff]   ;;  %v3848_v48 = vld [vmem:[%s5215_s1 + $0x458] sm:$0xff]  }
  0x4c   :  { %3402 = vmatpush3.bf16.msra.mxu0 %v3777_v54  ;;  %2064 = vmatmul.mubr.bf16.gmra.mxu1 %v179_v57  ;;  %v3814_v54 = vld [vmem:[%s5215_s1 + $0x3e0] sm:$0xff]   ;;  %v3817_v57 = vld [vmem:[%s5215_s1 + $0x318] sm:$0xff]  }
  0x4d   :  { %3430 = vmatpush3.bf16.msra.mxu1 %v3779_v59  ;;  %3403 = vmatprep.subr.bf16.mxu0 %v3780_v60  ;;  %v3819_v59 = vld [vmem:[%s5215_s1 + $0x398] sm:$0xff]   ;;  %v3820_v60 = vld [vmem:[%s5215_s1 + $0x350] sm:$0xff]  }
  0x4e   :  { %3431 = vmatprep.subr.bf16.mxu1 %v3782_v62  ;;  %2104 = vmatprep.mubr.bf16.mxu0 %v156_v17  ;;  %v3822_v62 = vld [vmem:[%s5215_s1 + $0x3d0] sm:$0xff]   ;;  %v162_v17 = vpack.c.bf16 %v84_v16, %v58_v15  ;;  %v3867_v15 = vld [vmem:[%s5215_s1 + $0x5b8] sm:$0xff]  }
  0x4f   :  { %2153 = vmatprep.mubr.bf16.mxu1 %v158_v25  ;;  %v3837_v25 = vld [vmem:[%s5215_s1 + $0x430] sm:$0xff]  }
  0x50   :  { %3404 = vmatpush3.bf16.msra.mxu0 %v3781_v61  ;;  %v3821_v61 = vld [vmem:[%s5215_s1 + $0x310] sm:$0xff]  }
  0x51   :  { %3432 = vmatpush3.bf16.msra.mxu1 %v3783_v63  ;;  %3405 = vmatprep.subr.bf16.mxu0 %v3784_v0  ;;  %v3823_v63 = vld [vmem:[%s5215_s1 + $0x390] sm:$0xff]   ;;  %v3824_v0 = vld [vmem:[%s5215_s1 + $0x348] sm:$0xff]  }
  0x52   :  { %3433 = vmatprep.subr.bf16.mxu1 %v3786_v2  ;;  %v3826_v2 = vld [vmem:[%s5215_s1 + $0x3c8] sm:$0xff]   ;;  %v3868_v16 = vld [vmem:[%s5215_s1 + $0x570] sm:$0xff]  }
  0x54   :  { %3406 = vmatpush3.bf16.msra.mxu0 %v3785_v1  ;;  %v3825_v1 = vld [vmem:[%s5215_s1 + $0x308] sm:$0xff]  }
  0x55   :  { %3434 = vmatpush3.bf16.msra.mxu1 %v3787_v3  ;;  %3407 = vmatprep.subr.bf16.mxu0 %v3788_v4  ;;  %v3827_v3 = vld [vmem:[%s5215_s1 + $0x388] sm:$0xff]   ;;  %v3828_v4 = vld [vmem:[%s5215_s1 + $0x340] sm:$0xff]  }
  0x56   :  { %3435 = vmatprep.subr.bf16.mxu1 %v3790_v6  ;;  %v3830_v6 = vld [vmem:[%s5215_s1 + $0x3c0] sm:$0xff]  }
  0x58   :  { %3408 = vmatpush3.bf16.msra.mxu0 %v3789_v5  ;;  %v3829_v5 = vld [vmem:[%s5215_s1 + $0x300] sm:$0xff]  }
  0x59   :  { %3436 = vmatpush3.bf16.msra.mxu1 %v3791_v7  ;;  %3409 = vmatprep.subr.bf16.mxu0 %v3792_v8  ;;  %v56_v7 = vld [vmem:[%s5216_s0 + $0x68] sm:$0xff]  ;;  %v82_v8 = vld [vmem:[%s5216_s0 + $0x138] sm:$0xff] }
  0x5a   :  { %3437 = vmatprep.subr.bf16.mxu1 %v3794_v10  ;;  %v3831_v10 = vld [vmem:[%s5215_s1 + $0x380] sm:$0xff]  }
  0x5c   :  { %3410 = vmatpush3.bf16.msra.mxu0 %v3793_v9  ;;  %v160_v9 = vpack.c.bf16 %v82_v8, %v56_v7  ;;  %v62_v7 = vld [vmem:[%s5216_s0 + $0x98] sm:$0xff]  ;;  %v88_v8 = vld [vmem:[%s5216_s0 + $0x168] sm:$0xff] }
  0x5d   :  { %3438 = vmatpush3.bf16.msra.mxu1 %v3795_v11  ;;  %3411 = vmatprep.subr.bf16.mxu0 %v3796_v12  ;;  %v55_v11 = vld [vmem:[%s5216_s0 + $0x60] sm:$0xff]  ;;  %v81_v12 = vld [vmem:[%s5216_s0 + $0x130] sm:$0xff] }
  0x5e   :  { %3439 = vmatprep.subr.bf16.mxu1 %v3798_v14  ;;  %v3832_v14 = vld [vmem:[%s5215_s1 + $0x478] sm:$0xff]  }
  0x60   :  { %3412 = vmatpush3.bf16.msra.mxu0 %v3797_v13  ;;  %v159_v13 = vpack.c.bf16 %v81_v12, %v55_v11  ;;  %v61_v11 = vld [vmem:[%s5216_s0 + $0x90] sm:$0xff]  ;;  %v87_v12 = vld [vmem:[%s5216_s0 + $0x160] sm:$0xff] }
  0x61   :  { %3440 = vmatpush3.bf16.msra.mxu1 %v3799_v18  ;;  %3453 = vmatprep.subr.bf16.mxu0 %v3800_v22  ;;  %v3833_v18 = vld [vmem:[%s5215_s1 + $0x438] sm:$0xff]  }
  0x62   :  { %3481 = vmatprep.subr.bf16.mxu1 %v3802_v30  ;;  %v3834_v22 = vld [vmem:[%s5215_s1 + $0x4f8] sm:$0xff]   ;;  %v3839_v30 = vld [vmem:[%s5215_s1 + $0x4b0] sm:$0xff]  }
  0x63   :  { %2105 = vmatmul.mubr.bf16.vlgmr.msra.gmra.mxu0 %v155_v21  ;;  %v161_v21 = vpack.c.bf16 %v83_v20, %v57_v19  ;;  %v112_v19 = vld [vmem:[%s5216_s0 + $0x228] sm:$0xff]  ;;  %v138_v20 = vld [vmem:[%s5216_s0 + $0x2f8] sm:$0xff] }
  0x64   :  { %3454 = vmatpush3.bf16.msra.mxu0 %v3801_v26  ;;  %2154 = vmatmul.mubr.bf16.vlgmr.msra.gmra.mxu1 %v157_v29  ;;  %v3838_v26 = vld [vmem:[%s5215_s1 + $0x4f0] sm:$0xff]   ;;  %v186_v29 = vpack.c.bf16 %v134_v28, %v108_v27  ;;  %v114_v27 = vld [vmem:[%s5216_s0 + $0x238] sm:$0xff]  ;;  %v140_v28 = vld [vmem:[%s5216_s0 + $0x308] sm:$0xff] }
  0x65   :  { %3482 = vmatpush3.bf16.msra.mxu1 %v3803_v31  ;;  %3455 = vmatprep.subr.bf16.mxu0 %v3804_v32  ;;  %v107_v31 = vld [vmem:[%s5216_s0 + $0x200] sm:$0xff]  ;;  %v133_v32 = vld [vmem:[%s5216_s0 + $0x2d0] sm:$0xff] }
  0x66   :  { %3483 = vmatprep.subr.bf16.mxu1 %v3806_v34  ;;  %2112 = vmatprep.mubr.bf16.mxu0 %v182_v37  ;;  %v3840_v34 = vld [vmem:[%s5215_s1 + $0x468] sm:$0xff]   ;;  %v188_v37 = vpack.c.bf16 %v136_v36, %v110_v35  ;;  %v3876_v36 = vld [vmem:[%s5215_s1 + $0x560] sm:$0xff]  }
  0x67   :  { %2161 = vmatprep.mubr.bf16.mxu1 %v184_v45  ;;  %v3845_v45 = vld [vmem:[%s5215_s1 + $0x420] sm:$0xff]   ;;  %v3875_v35 = vld [vmem:[%s5215_s1 + $0x5a8] sm:$0xff]  }
  0x68   :  { %3456 = vmatpush3.bf16.msra.mxu0 %v3805_v33  ;;  %v185_v33 = vpack.c.bf16 %v133_v32, %v107_v31  ;;  %v113_v31 = vld [vmem:[%s5216_s0 + $0x230] sm:$0xff]  ;;  %v139_v32 = vld [vmem:[%s5216_s0 + $0x300] sm:$0xff] }
  0x69   :  { %3484 = vmatpush3.bf16.msra.mxu1 %v3807_v38  ;;  %3457 = vmatprep.subr.bf16.mxu0 %v3808_v42  ;;  %v3841_v38 = vld [vmem:[%s5215_s1 + $0x428] sm:$0xff]  }
  0x6a   :  { %3485 = vmatprep.subr.bf16.mxu1 %v3810_v50  ;;  %v3842_v42 = vld [vmem:[%s5215_s1 + $0x4e8] sm:$0xff]   ;;  %v3850_v50 = vld [vmem:[%s5215_s1 + $0x4d8] sm:$0xff]  }
  0x6b   :  { %2113 = vmatmul.mubr.bf16.gmra.mxu0 %v181_v41  ;;  %v187_v41 = vpack.c.bf16 %v135_v40, %v109_v39  ;;  %v3879_v39 = vld [vmem:[%s5215_s1 + $0x5a0] sm:$0xff]   ;;  %v3880_v40 = vld [vmem:[%s5215_s1 + $0x558] sm:$0xff]  }
  0x6c   :  { %3458 = vmatpush3.bf16.msra.mxu0 %v3809_v46  ;;  %2162 = vmatmul.mubr.bf16.gmra.mxu1 %v183_v49  ;;  %v3846_v46 = vld [vmem:[%s5215_s1 + $0x4e0] sm:$0xff]   ;;  %v3849_v49 = vld [vmem:[%s5215_s1 + $0x418] sm:$0xff]  }
  0x6d   :  { %3486 = vmatpush3.bf16.msra.mxu1 %v3811_v51  ;;  %3459 = vmatprep.subr.bf16.mxu0 %v3812_v52  ;;  %v3851_v51 = vld [vmem:[%s5215_s1 + $0x498] sm:$0xff]   ;;  %v3852_v52 = vld [vmem:[%s5215_s1 + $0x450] sm:$0xff]  }
  0x6e   :  { %3487 = vmatprep.subr.bf16.mxu1 %v3814_v54  ;;  %2202 = vmatprep.mubr.bf16.mxu0 %v160_v9  ;;  %v3854_v54 = vld [vmem:[%s5215_s1 + $0x4d0] sm:$0xff]   ;;  %v166_v9 = vpack.c.bf16 %v88_v8, %v62_v7  ;;  %v91_v8 = vld [vmem:[%s5216_s0 + $0x180] sm:$0xff] }
  0x6f   :  { %2251 = vmatprep.mubr.bf16.mxu1 %v162_v17  ;;  %v3869_v17 = vld [vmem:[%s5215_s1 + $0x530] sm:$0xff]  }
  0x70   :  { %3460 = vmatpush3.bf16.msra.mxu0 %v3813_v53  ;;  %v3853_v53 = vld [vmem:[%s5215_s1 + $0x410] sm:$0xff]  }
  0x71   :  { %3488 = vmatpush3.bf16.msra.mxu1 %v3815_v55  ;;  %3461 = vmatprep.subr.bf16.mxu0 %v3816_v56  ;;  %v3855_v55 = vld [vmem:[%s5215_s1 + $0x490] sm:$0xff]   ;;  %v3856_v56 = vld [vmem:[%s5215_s1 + $0x448] sm:$0xff]  }
  0x72   :  { %3489 = vmatprep.subr.bf16.mxu1 %v3818_v58  ;;  %v3858_v58 = vld [vmem:[%s5215_s1 + $0x4c8] sm:$0xff]   ;;  %v65_v7 = vld [vmem:[%s5216_s0 + $0xb0] sm:$0xff] }
  0x74   :  { %3462 = vmatpush3.bf16.msra.mxu0 %v3817_v57  ;;  %v3857_v57 = vld [vmem:[%s5215_s1 + $0x408] sm:$0xff]  }
  0x75   :  { %3490 = vmatpush3.bf16.msra.mxu1 %v3819_v59  ;;  %3463 = vmatprep.subr.bf16.mxu0 %v3820_v60  ;;  %v3859_v59 = vld [vmem:[%s5215_s1 + $0x488] sm:$0xff]   ;;  %v3860_v60 = vld [vmem:[%s5215_s1 + $0x440] sm:$0xff]  }
  0x76   :  { %3491 = vmatprep.subr.bf16.mxu1 %v3822_v62  ;;  %v3862_v62 = vld [vmem:[%s5215_s1 + $0x4c0] sm:$0xff]  }
  0x78   :  { %3464 = vmatpush3.bf16.msra.mxu0 %v3821_v61  ;;  %v3861_v61 = vld [vmem:[%s5215_s1 + $0x400] sm:$0xff]  }
  0x79   :  { %3492 = vmatpush3.bf16.msra.mxu1 %v3823_v63  ;;  %3465 = vmatprep.subr.bf16.mxu0 %v3824_v0  ;;  %v60_v63 = vld [vmem:[%s5216_s0 + $0x88] sm:$0xff]  ;;  %v86_v0 = vld [vmem:[%s5216_s0 + $0x158] sm:$0xff] }
  0x7a   :  { %3493 = vmatprep.subr.bf16.mxu1 %v3826_v2  ;;  %v3863_v2 = vld [vmem:[%s5215_s1 + $0x480] sm:$0xff]  }
  0x7c   :  { %3466 = vmatpush3.bf16.msra.mxu0 %v3825_v1  ;;  %v164_v1 = vpack.c.bf16 %v86_v0, %v60_v63 }
  0x7d   :  { %3494 = vmatpush3.bf16.msra.mxu1 %v3827_v3  ;;  %3467 = vmatprep.subr.bf16.mxu0 %v3828_v4  ;;  %v59_v3 = vld [vmem:[%s5216_s0 + $0x80] sm:$0xff]  ;;  %v85_v4 = vld [vmem:[%s5216_s0 + $0x150] sm:$0xff] }
  0x7e   :  { %3495 = vmatprep.subr.bf16.mxu1 %v3830_v6  ;;  %v3864_v6 = vld [vmem:[%s5215_s1 + $0x578] sm:$0xff]  }
  0x80   :  { %3468 = vmatpush3.bf16.msra.mxu0 %v3829_v5  ;;  %v163_v5 = vpack.c.bf16 %v85_v4, %v59_v3  ;;  %v92_v3 = vld [vmem:[%s5216_s0 + $0x188] sm:$0xff] }
  0x81   :  { %3496 = vmatpush3.bf16.msra.mxu1 %v3831_v10  ;;  %3509 = vmatprep.subr.bf16.mxu0 %v3832_v14  ;;  %v3865_v10 = vld [vmem:[%s5215_s1 + $0x538] sm:$0xff]  }
  0x82   :  { %3537 = vmatprep.subr.bf16.mxu1 %v3834_v22  ;;  %v3866_v14 = vld [vmem:[%s5215_s1 + $0x5f8] sm:$0xff]   ;;  %v3871_v22 = vld [vmem:[%s5215_s1 + $0x5b0] sm:$0xff]  }
  0x83   :  { %2203 = vmatmul.mubr.bf16.vlgmr.msra.gmra.mxu0 %v159_v13  ;;  %v165_v13 = vpack.c.bf16 %v87_v12, %v61_v11  ;;  %v3899_v11 = vld [vmem:[%s5215_s1 + $0x630] sm:$0xff]   ;;  %v116_v12 = vld [vmem:[%s5216_s0 + $0x248] sm:$0xff] }
  0x84   :  { %3510 = vmatpush3.bf16.msra.mxu0 %v3833_v18  ;;  %2252 = vmatmul.mubr.bf16.vlgmr.msra.gmra.mxu1 %v161_v21  ;;  %v3870_v18 = vld [vmem:[%s5215_s1 + $0x5f0] sm:$0xff]   ;;  %v190_v21 = vpack.c.bf16 %v138_v20, %v112_v19  ;;  %v118_v19 = vld [vmem:[%s5216_s0 + $0x258] sm:$0xff]  ;;  %v144_v20 = vld [vmem:[%s5216_s0 + $0x328] sm:$0xff] }
  0x85   :  { %3538 = vmatpush3.bf16.msra.mxu1 %v3835_v23  ;;  %3511 = vmatprep.subr.bf16.mxu0 %v3836_v24  ;;  %v111_v23 = vld [vmem:[%s5216_s0 + $0x220] sm:$0xff]  ;;  %v137_v24 = vld [vmem:[%s5216_s0 + $0x2f0] sm:$0xff] }
  0x86   :  { %3539 = vmatprep.subr.bf16.mxu1 %v3838_v26  ;;  %2210 = vmatprep.mubr.bf16.mxu0 %v186_v29  ;;  %v3872_v26 = vld [vmem:[%s5215_s1 + $0x568] sm:$0xff]   ;;  %v192_v29 = vpack.c.bf16 %v140_v28, %v114_v27  ;;  %v3902_v28 = vld [vmem:[%s5215_s1 + $0x660] sm:$0xff]  }
  0x87   :  { %2259 = vmatprep.mubr.bf16.mxu1 %v188_v37  ;;  %v3877_v37 = vld [vmem:[%s5215_s1 + $0x520] sm:$0xff]  }
  0x88   :  { %3512 = vmatpush3.bf16.msra.mxu0 %v3837_v25  ;;  %v189_v25 = vpack.c.bf16 %v137_v24, %v111_v23  ;;  %v3901_v23 = vld [vmem:[%s5215_s1 + $0x628] sm:$0xff]   ;;  %v117_v24 = vld [vmem:[%s5216_s0 + $0x250] sm:$0xff] }
  0x89   :  { %3540 = vmatpush3.bf16.msra.mxu1 %v3839_v30  ;;  %3513 = vmatprep.subr.bf16.mxu0 %v3840_v34  ;;  %v3873_v30 = vld [vmem:[%s5215_s1 + $0x528] sm:$0xff]  }
  0x8a   :  { %3541 = vmatprep.subr.bf16.mxu1 %v3842_v42  ;;  %v3874_v34 = vld [vmem:[%s5215_s1 + $0x5e8] sm:$0xff]   ;;  %v3882_v42 = vld [vmem:[%s5215_s1 + $0x5d8] sm:$0xff]  }
  0x8b   :  { %2211 = vmatmul.mubr.bf16.gmra.mxu0 %v185_v33  ;;  %v191_v33 = vpack.c.bf16 %v139_v32, %v113_v31 }
  0x8c   :  { %3514 = vmatpush3.bf16.msra.mxu0 %v3841_v38  ;;  %2260 = vmatmul.mubr.bf16.gmra.mxu1 %v187_v41  ;;  %v3878_v38 = vld [vmem:[%s5215_s1 + $0x5e0] sm:$0xff]   ;;  %v3881_v41 = vld [vmem:[%s5215_s1 + $0x518] sm:$0xff]  }
  0x8d   :  { %3542 = vmatpush3.bf16.msra.mxu1 %v3843_v43  ;;  %3515 = vmatprep.subr.bf16.mxu0 %v3844_v44  ;;  %v3883_v43 = vld [vmem:[%s5215_s1 + $0x598] sm:$0xff]   ;;  %v3884_v44 = vld [vmem:[%s5215_s1 + $0x550] sm:$0xff]  }
  0x8e   :  { %3543 = vmatprep.subr.bf16.mxu1 %v3846_v46  ;;  %2300 = vmatprep.mubr.bf16.mxu0 %v164_v1  ;;  %v3886_v46 = vld [vmem:[%s5215_s1 + $0x5d0] sm:$0xff]   ;;  %v3896_v1 = vld [vmem:[%s5215_s1 + $0x678] sm:$0x1f]  }
  0x8f   :  { %2349 = vmatprep.mubr.bf16.mxu1 %v166_v9  ;;  %v169_v9 = vpack.c.bf16 %v91_v8, %v65_v7 }
  0x90   :  { %3516 = vmatpush3.bf16.msra.mxu0 %v3845_v45  ;;  %v3885_v45 = vld [vmem:[%s5215_s1 + $0x510] sm:$0xff]  }
  0x91   :  { %3544 = vmatpush3.bf16.msra.mxu1 %v3847_v47  ;;  %3517 = vmatprep.subr.bf16.mxu0 %v3848_v48  ;;  %v3887_v47 = vld [vmem:[%s5215_s1 + $0x590] sm:$0xff]   ;;  %v3888_v48 = vld [vmem:[%s5215_s1 + $0x548] sm:$0xff]  }
  0x92   :  { %3545 = vmatprep.subr.bf16.mxu1 %v3850_v50  ;;  %v3890_v50 = vld [vmem:[%s5215_s1 + $0x5c8] sm:$0xff]  }
  0x94   :  { %3518 = vmatpush3.bf16.msra.mxu0 %v3849_v49  ;;  %v3889_v49 = vld [vmem:[%s5215_s1 + $0x508] sm:$0xff]  }
  0x95   :  { %3546 = vmatpush3.bf16.msra.mxu1 %v3851_v51  ;;  %3519 = vmatprep.subr.bf16.mxu0 %v3852_v52  ;;  %v3891_v51 = vld [vmem:[%s5215_s1 + $0x588] sm:$0xff]   ;;  %v3892_v52 = vld [vmem:[%s5215_s1 + $0x540] sm:$0xff]  }
  0x96   :  { %3547 = vmatprep.subr.bf16.mxu1 %v3854_v54  ;;  %v3964_v54 = vmov 65535  }
  0x98   :  { %3520 = vmatpush3.bf16.msra.mxu0 %v3853_v53  ;;  %v3893_v53 = vld [vmem:[%s5215_s1 + $0x500] sm:$0xff]  }
  0x99   :  { %3548 = vmatpush3.bf16.msra.mxu1 %v3855_v55  ;;  %3521 = vmatprep.subr.bf16.mxu0 %v3856_v56  ;;  %v1871_v55 = vsel %vm1869_vm0, 4294967295, %v3964_v54  ;;  %v3894_v56 = vld [vmem:[%s5215_s1 + $0x5c0] sm:$0xff]   ;;  %v93_v54 = vld [vmem:[%s5216_s0 + $0x190] sm:$0xff] }
  0x9a   :  { %3549 = vmatprep.subr.bf16.mxu1 %v3858_v58  ;;  %v90_v58 = vld [vmem:[%s5216_s0 + $0x178] sm:$0xff]  ;;  %v1872_v63 = vsel %vm1870_vm1, %v1871_v55, 0  ;;  %v120_v55 = vld [vmem:[%s5216_s0 + $0x268] sm:$0xff] }
  0x9b   :  { %v1874_v4 = vand.u32 %v3896_v1, %v1872_v63 }
  0x9c   :  { %3522 = vmatpush3.bf16.msra.mxu0 %v3857_v57  ;;  %v64_v57 = vld [vmem:[%s5216_s0 + $0xa8] sm:$0xff] }
  0x9d   :  { %3550 = vmatpush3.bf16.msra.mxu1 %v3859_v59  ;;  %3523 = vmatprep.subr.bf16.mxu0 %v3860_v60  ;;  %v168_v59 = vpack.c.bf16 %v90_v58, %v64_v57  ;;  %v3895_v60 = vld [vmem:[%s5215_s1 + $0x580] sm:$0xff]  }
  0x9e   :  { %3551 = vmatprep.subr.bf16.mxu1 %v3862_v62  ;;  %v89_v62 = vld [vmem:[%s5216_s0 + $0x170] sm:$0xff] }
  0xa0   :  { %3524 = vmatpush3.bf16.msra.mxu0 %v3861_v61  ;;  %v63_v61 = vld [vmem:[%s5216_s0 + $0xa0] sm:$0xff] }
  0xa1   :  { %3552 = vmatpush3.bf16.msra.mxu1 %v3863_v2  ;;  %3565 = vmatprep.subr.bf16.mxu0 %v3864_v6  ;;  %v167_v0 = vpack.c.bf16 %v89_v62, %v63_v61  ;;  %v66_v2 = vld [vmem:[%s5216_s0 + $0xb8] sm:$0xff] }
  0xa2   :  { %3593 = vmatprep.subr.bf16.mxu1 %v3866_v14  ;;  %v3897_v6 = vld [vmem:[%s5215_s1 + $0x638] sm:$0xff]  }
  0xa3   :  { %2301 = vmatmul.mubr.bf16.vlgmr.msra.gmra.mxu0 %v163_v5  ;;  %v170_v5 = vpack.c.bf16 %v92_v3, %v66_v2 }
  0xa4   :  { %3566 = vmatpush3.bf16.msra.mxu0 %v3865_v10  ;;  %2350 = vmatmul.mubr.bf16.vlgmr.msra.gmra.mxu1 %v165_v13  ;;  %v3898_v10 = vld [vmem:[%s5215_s1 + $0x670] sm:$0xff]   ;;  %v142_v13 = vld [vmem:[%s5216_s0 + $0x318] sm:$0xff] }
  0xa5   :  { %3594 = vmatpush3.bf16.msra.mxu1 %v3867_v15  ;;  %3567 = vmatprep.subr.bf16.mxu0 %v3868_v16  ;;  %v194_v14 = vpack.c.bf16 %v142_v13, %v116_v12  ;;  %v115_v15 = vld [vmem:[%s5216_s0 + $0x240] sm:$0xff]  ;;  %v141_v16 = vld [vmem:[%s5216_s0 + $0x310] sm:$0xff] }
  0xa6   :  { %3595 = vmatprep.subr.bf16.mxu1 %v3870_v18  ;;  %2308 = vmatprep.mubr.bf16.mxu0 %v190_v21  ;;  %v3900_v18 = vld [vmem:[%s5215_s1 + $0x668] sm:$0xff]  }
  0xa7   :  { %2357 = vmatprep.mubr.bf16.mxu1 %v192_v29 }
  0xa8   :  { %3568 = vmatpush3.bf16.msra.mxu0 %v3869_v17  ;;  %v193_v17 = vpack.c.bf16 %v141_v16, %v115_v15 }
  0xa9   :  { %3596 = vmatpush3.bf16.msra.mxu1 %v3871_v22  ;;  %3569 = vmatprep.subr.bf16.mxu0 %v3872_v26  ;;  %v196_v22 = vpack.c.bf16 %v144_v20, %v118_v19 }
  0xaa   :  { %3597 = vmatprep.subr.bf16.mxu1 %v3874_v34  ;;  %v3903_v34 = vld [vmem:[%s5215_s1 + $0x620] sm:$0xff]  }
  0xab   :  { %2309 = vmatmul.mubr.bf16.gmra.mxu0 %v189_v25  ;;  %v143_v25 = vld [vmem:[%s5216_s0 + $0x320] sm:$0xff] }
  0xac   :  { %3570 = vmatpush3.bf16.msra.mxu0 %v3873_v30  ;;  %2358 = vmatmul.mubr.bf16.gmra.mxu1 %v191_v33  ;;  %v195_v27 = vpack.c.bf16 %v143_v25, %v117_v24 }
  0xad   :  { %3598 = vmatpush3.bf16.msra.mxu1 %v3875_v35  ;;  %3571 = vmatprep.subr.bf16.mxu0 %v3876_v36  ;;  %v3904_v36 = vld [vmem:[%s5215_s1 + $0x658] sm:$0xff]  }
  0xae   :  { %3599 = vmatprep.subr.bf16.mxu1 %v3878_v38  ;;  %2398 = vmatprep.mubr.bf16.mxu0 %v168_v59 }
  0xaf   :  { %2447 = vmatprep.mubr.bf16.mxu1 %v170_v5  ;;  %v145_v5 = vld [vmem:[%s5216_s0 + $0x330] sm:$0xff] }
  0xb0   :  { %3572 = vmatpush3.bf16.msra.mxu0 %v3877_v37 }
  0xb1   :  { %3600 = vmatpush3.bf16.msra.mxu1 %v3879_v39  ;;  %3573 = vmatprep.subr.bf16.mxu0 %v3880_v40 }
  0xb2   :  { %3601 = vmatprep.subr.bf16.mxu1 %v3882_v42  ;;  %v3905_v42 = vld [vmem:[%s5215_s1 + $0x618] sm:$0xff]  }
  0xb4   :  { %3574 = vmatpush3.bf16.msra.mxu0 %v3881_v41 }
  0xb5   :  { %3602 = vmatpush3.bf16.msra.mxu1 %v3883_v43  ;;  %3575 = vmatprep.subr.bf16.mxu0 %v3884_v44  ;;  %v3906_v43 = vld [vmem:[%s5215_s1 + $0x650] sm:$0xff]  }
  0xb6   :  { %3603 = vmatprep.subr.bf16.mxu1 %v3886_v46  ;;  %v94_v46 = vld [vmem:[%s5216_s0 + $0x198] sm:$0xff] }
  0xb8   :  { %3576 = vmatpush3.bf16.msra.mxu0 %v3885_v45  ;;  %v68_v45 = vld [vmem:[%s5216_s0 + $0xc8] sm:$0xff] }
  0xb9   :  { %3604 = vmatpush3.bf16.msra.mxu1 %v3887_v47  ;;  %3577 = vmatprep.subr.bf16.mxu0 %v3888_v48  ;;  %v3907_v47 = vld [vmem:[%s5215_s1 + $0x610] sm:$0xff]   ;;  %v172_v48 = vpack.c.bf16 %v94_v46, %v68_v45 }
  0xba   :  { %3605 = vmatprep.subr.bf16.mxu1 %v3890_v50  ;;  %v3909_v50 = vld [vmem:[%s5215_s1 + $0x608] sm:$0xff]  }
  0xbc   :  { %3578 = vmatpush3.bf16.msra.mxu0 %v3889_v49  ;;  %v3908_v49 = vld [vmem:[%s5215_s1 + $0x648] sm:$0xff]  }
  0xbd   :  { %3606 = vmatpush3.bf16.msra.mxu1 %v3891_v51  ;;  %3579 = vmatprep.subr.bf16.mxu0 %v3892_v52  ;;  %v3910_v51 = vld [vmem:[%s5215_s1 + $0x640] sm:$0xff]  }
  0xbe   :  { %3607 = vmatprep.subr.bf16.mxu1 %v3894_v56  ;;  %v3911_v52 = vld [vmem:[%s5215_s1 + $0x600] sm:$0xff]   ;;  %v146_v56 = vld [vmem:[%s5216_s0 + $0x338] sm:$0xff] }
  0xbf   :  { %v198_v61 = vpack.c.bf16 %v146_v56, %v120_v55  ;;  %v3913_v55 = vld [vmem:[%s5217_s2 + $0x10] sm:$0xff]  }
  0xc0   :  { %3580 = vmatpush3.bf16.msra.mxu0 %v3893_v53  ;;  %v67_v53 = vld [vmem:[%s5216_s0 + $0xc0] sm:$0xff] }
  0xc1   :  { %3608 = vmatpush3.bf16.msra.mxu1 %v3895_v60  ;;  %3621 = vmatprep.subr.bf16.mxu0 %v1874_v4  ;;  %v171_v59 = vpack.c.bf16 %v93_v54, %v67_v53  ;;  %v119_v4 = vld [vmem:[%s5216_s0 + $0x260] sm:$0xff] }
  0xc2   :  { %v197_v7 = vpack.c.bf16 %v145_v5, %v119_v4 }
  0xc3   :  { %2399 = vmatmul.mubr.bf16.vlgmr.msra.gmra.mxu0 %v167_v0 }
  0xc4   :  { %3622 = vmatpush3.bf16.msra.mxu0 %v3897_v6  ;;  %2448 = vmatmul.mubr.bf16.vlgmr.msra.gmra.mxu1 %v169_v9 }
  0xc5   :  { %3623 = vmatprep.subr.bf16.mxu0 %v3898_v10  ;;  %2406 = vmatprep.mubr.bf16.mxu0 %v194_v14 }
  0xc6   :  { %2455 = vmatprep.mubr.bf16.mxu1 %v196_v22 }
  0xc8   :  { %3624 = vmatpush3.bf16.msra.mxu0 %v3899_v11 }
  0xc9   :  { %3625 = vmatprep.subr.bf16.mxu0 %v3900_v18 }
  0xcb   :  { %2407 = vmatmul.mubr.bf16.gmra.mxu0 %v193_v17 }
  0xcc   :  { %3626 = vmatpush3.bf16.msra.mxu0 %v3901_v23  ;;  %2456 = vmatmul.mubr.bf16.gmra.mxu1 %v195_v27 }
  0xcd   :  { %3627 = vmatprep.subr.bf16.mxu0 %v3902_v28  ;;  %3257 = vmatprep.mubr.msk.bf16.mxu0 %vm1862_vm2, %v172_v48 }
  0xd0   :  { %3628 = vmatpush3.bf16.msra.mxu0 %v3903_v34 }
  0xd1   :  { %3629 = vmatprep.subr.bf16.mxu0 %v3904_v36 }
  0xd4   :  { %3630 = vmatpush3.bf16.msra.mxu0 %v3905_v42 }
  0xd5   :  { %3631 = vmatprep.subr.bf16.mxu0 %v3906_v43 }
  0xd8   :  { %3632 = vmatpush3.bf16.msra.mxu0 %v3907_v47 }
  0xd9   :  { %3633 = vmatprep.subr.bf16.mxu0 %v3908_v49 }
  0xdc   :  { %3634 = vmatpush3.bf16.msra.mxu0 %v3909_v50 }
  0xdd   :  { %3635 = vmatprep.subr.bf16.mxu0 %v3910_v51 }
  0xe0   :  { %3636 = vmatpush3.bf16.msra.mxu0 %v3911_v52  ;;  %v3912_v52 = vld [vmem:[%s5217_s2 + $0x18] sm:$0xff]  }
  0xe1   :  { %3667 = vmatprep.subr.bf16.mxu1 %v3912_v52 }
  0xe2   :  { %3668 = vmatpush3.bf16.msra.mxu1 %v3912_v52 }
  0xe3   :  { %v3301_v21 = vpop.f32.mrf.mxu0  ;;  %2497 = vmatmul.mubr.bf16.vlgmr.msra.gmra.mxu0 %v171_v59  ;;  %3669 = vmatprep.subr.bf16.mxu1 %v3913_v55 }
  0xe4   :  { %v3329_v26 = vpop.f32.mrf.mxu1  ;;  %3258 = vmatprep.mubr.msk.bf16.mxu0 %vm1862_vm2, %v198_v61  ;;  %v3915_v61 = vld [vmem:[%s5217_s2] sm:$0xff]  }
  0xe5   :  { %v3302_v29 = vpop.f32.mrf.mxu0 }
  0xe6   :  { %v3303_v30 = vadd.f32 %v3302_v29, %v3301_v21  ;;  %v3330_v31 = vpop.f32.mrf.mxu1  ;;  %3670 = vmatpush3.bf16.msra.mxu1 %v3913_v55 }
  0xe7   :  { %v3331_v32 = vadd.f32 %v3330_v31, %v3329_v26  ;;  %v3304_v33 = vpop.f32.mrf.mxu0 }
  0xe8   :  { %v3332_v35 = vpop.f32.mrf.mxu1 }
  0xe9   :  { %v1960_v37 = vadd.f32 %v3331_v32, %v3303_v30  ;;  %v3305_v38 = vpop.f32.mrf.mxu0 }
  0xea   :  { %v3306_v39 = vadd.f32 %v3305_v38, %v3304_v33  ;;  %v3333_v40 = vpop.f32.mrf.mxu1 }
  0xeb   :  { %v3334_v41 = vadd.f32 %v3333_v40, %v3332_v35  ;;  %v3307_v57 = vpop.f32.mrf.mxu0  ;;  %2505 = vmatmul.mubr.bf16.gmra.mxu0 %v197_v7 }
  0xec   :  { %v3335_v58 = vpop.f32.mrf.mxu1 }
  0xed   :  { %v1963_v44 = vadd.f32 %v3334_v41, %v3306_v39  ;;  %v3308_v60 = vpop.f32.mrf.mxu0 }
  0xee   :  { %v3309_v62 = vadd.f32 %v3308_v60, %v3307_v57  ;;  %v3336_v63 = vpop.f32.mrf.mxu1 }
  0xef   :  { %v3337_v0 = vadd.f32 %v3336_v63, %v3335_v58  ;;  %v3310_v1 = vpop.f32.mrf.mxu0  ;;  %v3914_v58 = vld [vmem:[%s5217_s2 + $0x8] sm:$0xff]  }
  0xf0   :  { %v4936_v20 = vpop.f32.mrf.mxu1  ;;  %3671 = vmatprep.subr.bf16.mxu1 %v3914_v58 }
  0xf1   :  { %v1968_v2 = vadd.f32 %v3337_v0, %v3309_v62  ;;  %v3311_v3 = vpop.f32.mrf.mxu0  ;;  %3672 = vmatpush3.bf16.msra.mxu1 %v3914_v58 }
  0xf2   :  { %v4928_v6 = vadd.f32 %v3311_v3, %v3310_v1  ;;  %v4938_v21 = vpop.f32.mrf.mxu1  ;;  %3673 = vmatprep.subr.bf16.mxu1 %v3915_v61 }
  0xf5   :  { %3674 = vmatpush3.bf16.msra.mxu1 %v3915_v61 }
 0x103   :  { %v3357_v8 = vpop.f32.mrf.mxu0 }
 0x104   :  { %v4940_v22 = vpop.f32.mrf.mxu1 }
 0x105   :  { %v3358_v9 = vpop.f32.mrf.mxu0 }
 0x106   :  { %v3359_v10 = vadd.f32 %v3358_v9, %v3357_v8  ;;  %v4942_v23 = vpop.f32.mrf.mxu1 }
 0x107   :  { %v3360_v11 = vpop.f32.mrf.mxu0 }
 0x108   :  { %v4930_v12 = vadd.f32 %v3359_v10, %v1960_v37  ;;  %v4944_v24 = vpop.f32.mrf.mxu1 }
 0x109   :  { %v3361_v13 = vpop.f32.mrf.mxu0 }
 0x10a   :  { %v3362_v14 = vadd.f32 %v3361_v13, %v3360_v11  ;;  %v4946_v25 = vpop.f32.mrf.mxu1 }
 0x10b   :  { %v3363_v16 = vpop.f32.mrf.mxu0 }
 0x10c   :  { %v4932_v15 = vadd.f32 %v3362_v14, %v1963_v44  ;;  %v4950_v27 = vpop.f32.mrf.mxu1 }
 0x10d   :  { %v3364_v17 = vpop.f32.mrf.mxu0 }
 0x10e   :  { %v3365_v18 = vadd.f32 %v3364_v17, %v3363_v16  ;;  %v4954_v29 = vpop.f32.mrf.mxu1 }
 0x10f   :  { %v4948_v26 = vpop.f32.mrf.mxu0 }
 0x110   :  { %v4934_v19 = vadd.f32 %v3365_v18, %v1968_v2  ;;  %v4958_v31 = vpop.f32.mrf.mxu1 }
 0x111   :  { %v4952_v28 = vpop.f32.mrf.mxu0 }
 0x112   :  { %v4962_v33 = vpop.f32.mrf.mxu1 }
 0x123   :  { %v4956_v30 = vpop.f32.mrf.mxu0 }
 0x124   :  { %v4966_v35 = vpop.f32.mrf.mxu1 }
 0x125   :  { %v4960_v32 = vpop.f32.mrf.mxu0 }
 0x126   :  { %v4970_v37 = vpop.f32.mrf.mxu1 }
 0x127   :  { %v4964_v34 = vpop.f32.mrf.mxu0 }
 0x128   :  { %v4974_v39 = vpop.f32.mrf.mxu1 }
 0x129   :  { %v4968_v36 = vpop.f32.mrf.mxu0 }
 0x12a   :  { %v4978_v41 = vpop.f32.mrf.mxu1 }
 0x12b   :  { %v4972_v38 = vpop.f32.mrf.mxu0 }
 0x12c   :  { %v4982_v43 = vpop.f32.mrf.mxu1 }
 0x12d   :  { %v4976_v40 = vpop.f32.mrf.mxu0 }
 0x12e   :  { %v4986_v45 = vpop.f32.mrf.mxu1 }
 0x12f   :  { %v4980_v42 = vpop.f32.mrf.mxu0 }
 0x130   :  { %v4990_v47 = vpop.f32.mrf.mxu1 }
 0x131   :  { %v4984_v44 = vpop.f32.mrf.mxu0 }
 0x132   :  { %v4992_v49 = vpop.f32.mrf.mxu1 }
 0x143   :  { %v4988_v46 = vpop.f32.mrf.mxu0 }
 0x144   :  { %v4996_v51 = vpop.f32.mrf.mxu1 }
 0x145   :  { %v3470_v48 = vpop.f32.mrf.mxu0 }
 0x146   :  { %v5003_v54 = vpop.f32.mrf.mxu1 }
 0x147   :  { %v4994_v50 = vpop.f32.mrf.mxu0 }
 0x148   :  { %v5010_v57 = vpop.f32.mrf.mxu1 }
 0x149   :  { %v5001_v53 = vpop.f32.mrf.mxu0 }
 0x14a   :  { %v5017_v60 = vpop.f32.mrf.mxu1 }
 0x14b   :  { %v5008_v56 = vpop.f32.mrf.mxu0 }
 0x14c   :  { %v5024_v63 = vpop.f32.mrf.mxu1 }
 0x14d   :  { %v5015_v59 = vpop.f32.mrf.mxu0 }
 0x14e   :  { %v5028_v1 = vpop.f32.mrf.mxu1 }
 0x14f   :  { %v5022_v62 = vpop.f32.mrf.mxu0 }
 0x150   :  { %v5030_v3 = vpop.f32.mrf.mxu1 }
 0x151   :  { %v5026_v0 = vpop.f32.mrf.mxu0  ;;  %5220 = vst [vmem:[#allocation2_spill] sm:$0xff] %v5030_v3  ;;  %v3387_v3 = vadd.f32 %v4942_v23, %v4940_v22  ;;  %v3443_v22 = vadd.f32 %v4970_v37, %v4966_v35  ;;  %v3418_v23 = vadd.f32 %v4968_v36, %v4964_v34  ;;  %v3446_v34 = vadd.f32 %v4978_v41, %v4974_v39 }
 0x152   :  { %v5032_v5 = vpop.f32.mrf.mxu1  ;;  %v3499_v36 = vadd.f32 %v5003_v54, %v4996_v51 }
 0x153   :  { %5221 = vst [vmem:[#allocation3_spill] sm:$0xff] %v5032_v5 }
 0x163   :  { %v3525_v2 = vpop.f32.mrf.mxu0 }
 0x164   :  { %v3553_v8 = vpop.f32.mrf.mxu1 }
 0x165   :  { %v3526_v4 = vpop.f32.mrf.mxu0 }
 0x166   :  { %v3554_v10 = vpop.f32.mrf.mxu1  ;;  %v3527_v41 = vadd.f32 %v3526_v4, %v3525_v2  ;;  %v3505_v4 = vadd.f32 %v5028_v1, %v5024_v63  ;;  %v5234_v63 = vld [vmem:[#allocation3_spill] sm:$0xff] }
 0x167   :  { %v3528_v7 = vpop.f32.mrf.mxu0 }
 0x168   :  { %v5036_v13 = vpop.f32.mrf.mxu1 }
 0x169   :  { %v3529_v9 = vpop.f32.mrf.mxu0  ;;  %5222 = vst [vmem:[#allocation4_spill] sm:$0xff] %v5036_v13  ;;  %v3415_v13 = vadd.f32 %v4960_v32, %v4956_v30  ;;  %v3393_v30 = vadd.f32 %v4954_v29, %v4950_v27 }
 0x16a   :  { %v5040_v16 = vpop.f32.mrf.mxu1 }
 0x16b   :  { %v5034_v11 = vpop.f32.mrf.mxu0  ;;  %5224 = vst [vmem:[#allocation6_spill] sm:$0xff] %v5040_v16  ;;  %v2066_v27 = vadd.f32 %v3393_v30, %v4934_v19  ;;  %v3424_v19 = vadd.f32 %v4984_v44, %v4980_v42  ;;  %v3555_v42 = vadd.f32 %v3554_v10, %v3553_v8  ;;  %v3530_v44 = vadd.f32 %v3529_v9, %v3528_v7  ;;  %v5233_v30 = vld [vmem:[#allocation2_spill] sm:$0xff] }
 0x16c   :  { %v5044_v18 = vpop.f32.mrf.mxu1  ;;  %v3508_v1 = vadd.f32 %v5234_v63, %v5233_v30 }
 0x16d   :  { %v5038_v14 = vpop.f32.mrf.mxu0  ;;  %5226 = vst [vmem:[#allocation8_spill] sm:$0xff] %v5044_v18 }
 0x16e   :  { %5223 = vst [vmem:[#allocation5_spill] sm:$0xff] %v5038_v14  ;;  %v5048_v55 = vpop.f32.mrf.mxu1 }
 0x16f   :  { %v5042_v17 = vpop.f32.mrf.mxu0  ;;  %5228 = vst [vmem:[#allocation10_spill] sm:$0xff] %v5048_v55 }
 0x170   :  { %5225 = vst [vmem:[#allocation7_spill] sm:$0xff] %v5042_v17  ;;  %v5050_v61 = vpop.f32.mrf.mxu1  ;;  %v2058_v17 = vadd.f32 %v3387_v3, %v4930_v12  ;;  %v3368_v12 = vadd.f32 %v4952_v28, %v4948_v26  ;;  %v3396_v26 = vadd.f32 %v4962_v33, %v4958_v31  ;;  %v3477_v31 = vadd.f32 %v5015_v59, %v5008_v56 }
 0x171   :  { %v5046_v52 = vpop.f32.mrf.mxu0  ;;  %5229 = vst [vmem:[#allocation11_spill] sm:$0xff] %v5050_v61  ;;  %v3340_v61 = vadd.f32 %v4938_v21, %v4936_v20  ;;  %v3421_v21 = vadd.f32 %v4976_v40, %v4972_v38  ;;  %v3480_v56 = vadd.f32 %v5026_v0, %v5022_v62 }
 0x172   :  { %5227 = vst [vmem:[#allocation9_spill] sm:$0xff] %v5046_v52  ;;  %v5056_v14 = vpop.f32.mrf.mxu1  ;;  %v3390_v52 = vadd.f32 %v4946_v25, %v4944_v24  ;;  %v2107_v18 = vadd.f32 %v3415_v13, %v2058_v17  ;;  %v3471_v25 = vadd.f32 %v3470_v48, %v4988_v46  ;;  %v3449_v46 = vadd.f32 %v4986_v45, %v4982_v43  ;;  %v5232_v8 = vld [vmem:[#allocation6_spill] sm:$0xff] }
 0x173   :  { %v1971_v20 = vadd.f32 %v3340_v61, %v4928_v6  ;;  %v3474_v6 = vadd.f32 %v5001_v53, %v4994_v50  ;;  %v2115_v40 = vadd.f32 %v3421_v21, %v2066_v27  ;;  %v3502_v50 = vadd.f32 %v5017_v60, %v5010_v57 }
 0x174   :  { %v2061_v24 = vadd.f32 %v3390_v52, %v4932_v15  ;;  %v2156_v35 = vadd.f32 %v3443_v22, %v2107_v18  ;;  %v3452_v43 = vadd.f32 %v4992_v49, %v4990_v47  ;;  %v5231_v49 = vld [vmem:[#allocation4_spill] sm:$0xff] }
 0x175   :  { %v2020_v29 = vadd.f32 %v3368_v12, %v1971_v20  ;;  %v2164_v54 = vadd.f32 %v3449_v46, %v2115_v40  ;;  %v5230_v61 = vld [vmem:[#allocation5_spill] sm:$0xff]  ;;  %v3558_v7 = vadd.f32 %v5232_v8, %v5231_v49 }
 0x176   :  { %v2110_v37 = vadd.f32 %v3418_v23, %v2061_v24  ;;  %v2205_v28 = vadd.f32 %v3471_v25, %v2156_v35  ;;  %v3533_v22 = vadd.f32 %v5230_v61, %v5034_v11  ;;  %v5235_v25 = vld [vmem:[#allocation8_spill] sm:$0xff]  ;;  %v5236_v20 = vld [vmem:[#allocation10_spill] sm:$0xff] }
 0x177   :  { %v2069_v48 = vadd.f32 %v3396_v26, %v2020_v29  ;;  %v2213_v2 = vadd.f32 %v3477_v31, %v2164_v54  ;;  %v3561_v11 = vadd.f32 %v5236_v20, %v5235_v25  ;;  %v5237_v21 = vld [vmem:[#allocation7_spill] sm:$0xff] }
 0x178   :  { %v2159_v39 = vadd.f32 %v3446_v34, %v2110_v37  ;;  %v2254_v13 = vadd.f32 %v3499_v36, %v2205_v28 }
 0x179   :  { %v2118_v17 = vadd.f32 %v3424_v19, %v2069_v48  ;;  %v2262_v9 = vadd.f32 %v3505_v4, %v2213_v2  ;;  %v5238_v35 = vld [vmem:[#allocation9_spill] sm:$0xff] }
 0x17a   :  { %v2208_v51 = vadd.f32 %v3474_v6, %v2159_v39  ;;  %v2303_v45 = vadd.f32 %v3527_v41, %v2254_v13  ;;  %v3536_v37 = vadd.f32 %v5238_v35, %v5237_v21 }
 0x17b   :  { %v2167_v60 = vadd.f32 %v3452_v43, %v2118_v17  ;;  %v2311_v24 = vadd.f32 %v3533_v22, %v2262_v9 }
 0x17c   :  { %v2257_v18 = vadd.f32 %v3502_v50, %v2208_v51  ;;  %v2352_v23 = vadd.f32 %v3555_v42, %v2303_v45 }
 0x17d   :  { %v2216_v10 = vadd.f32 %v3480_v56, %v2167_v60 }
 0x17e   :  { %v2306_v47 = vadd.f32 %v3530_v44, %v2257_v18 }
 0x17f   :  { %v2265_v29 = vadd.f32 %v3508_v1, %v2216_v10 }
 0x180   :  { %v2355_v27 = vadd.f32 %v3558_v7, %v2306_v47 }
 0x183   :  { %v3581_v58 = vpop.f32.mrf.mxu0 }
 0x184   :  { %v3609_v55 = vpop.f32.mrf.mxu1 }
 0x185   :  { %v3582_v5 = vpop.f32.mrf.mxu0 }
 0x186   :  { %v3610_v3 = vpop.f32.mrf.mxu1  ;;  %v3583_v52 = vadd.f32 %v3582_v5, %v3581_v58 }
 0x187   :  { %v5058_v16 = vpop.f32.mrf.mxu0  ;;  %v3611_v0 = vadd.f32 %v3610_v3, %v3609_v55  ;;  %v2360_v3 = vadd.f32 %v3561_v11, %v2311_v24 }
 0x188   :  { %v3612_v38 = vpop.f32.mrf.mxu1  ;;  %v2401_v62 = vadd.f32 %v3583_v52, %v2352_v23 }
 0x189   :  { %v3585_v32 = vpop.f32.mrf.mxu0 }
 0x18a   :  { %v3613_v53 = vpop.f32.mrf.mxu1  ;;  %v3586_v5 = vadd.f32 %v3585_v32, %v5058_v16  ;;  %v2450_v36 = vadd.f32 %v3611_v0, %v2401_v62  ;;  %v2314_v16 = vadd.f32 %v3536_v37, %v2265_v29  ;;  %v5239_v32 = vld [vmem:[#allocation11_spill] sm:$0xff] }
 0x18b   :  { %v3587_v15 = vpop.f32.mrf.mxu0  ;;  %v3614_v40 = vadd.f32 %v3613_v53, %v3612_v38  ;;  %v3564_v19 = vadd.f32 %v5056_v14, %v5239_v32 }
 0x18c   :  { %v3615_v57 = vpop.f32.mrf.mxu1  ;;  %v2404_v6 = vadd.f32 %v3586_v5, %v2355_v27 }
 0x18d   :  { %v3588_v33 = vpop.f32.mrf.mxu0  ;;  %v2363_v54 = vadd.f32 %v3564_v19, %v2314_v16  ;;  %v2559_v19 = vlaneseq }
 0x18e   :  { %v3616_v58 = vpop.f32.mrf.mxu1  ;;  %v3589_v26 = vadd.f32 %v3588_v33, %v3587_v15  ;;  %v2453_v50 = vadd.f32 %v3614_v40, %v2404_v6 }
 0x18f   :  { %v3590_v59 = vpop.f32.mrf.mxu0  ;;  %v3617_v31 = vadd.f32 %v3616_v58, %v3615_v57 }
 0x190   :  { %v3618_v46 = vpop.f32.mrf.mxu1  ;;  %v2409_v48 = vadd.f32 %v3589_v26, %v2360_v3 }
 0x191   :  { %v3591_v12 = vpop.f32.mrf.mxu0 }
 0x192   :  { %v3592_v13 = vadd.f32 %v3591_v12, %v3590_v59  ;;  %v3619_v15 = vpop.f32.mrf.mxu1  ;;  %v2458_v43 = vadd.f32 %v3617_v31, %v2409_v48  ;;  %v5140_v31 = vld [vmem:[%s5218_s3] sm:$0xff] }
 0x193   :  { %v3620_v45 = vadd.f32 %v3619_v15, %v3618_v46 }
 0x194   :  { %v2412_v14 = vadd.f32 %v3592_v13, %v2363_v54 }
 0x196   :  { %v2461_v23 = vadd.f32 %v3620_v45, %v2412_v14 }
 0x1a3   :  { %v3637_v34 = vpop.f32.mrf.mxu0 }
 0x1a5   :  { %v3638_v28 = vpop.f32.mrf.mxu0 }
 0x1a6   :  { %v3639_v55 = vadd.f32 %v3638_v28, %v3637_v34 }
 0x1a7   :  { %v3640_v39 = vpop.f32.mrf.mxu0 }
 0x1a8   :  { %v5114_v41 = vadd.f32 %v3639_v55, %v2450_v36 }
 0x1a9   :  { %v3641_v51 = vpop.f32.mrf.mxu0 }
 0x1aa   :  { %v3642_v33 = vadd.f32 %v3641_v51, %v3640_v39  ;;  %v2527_v53 = vmul.f32 %v5114_v41, %v5114_v41  ;;  %v2514_v44 = vsel %vm2513_vm3, %v5114_v41, 0.0  ;;  %v5134_v39 = vshrl.u32 %v2559_v19, 7 }
 0x1ab   :  { %v3643_v38 = vpop.f32.mrf.mxu0 }
 0x1ac   :  { %v5118_v17 = vadd.f32 %v3642_v33, %v2453_v50  ;;  %v2531_v52 = vsel %vm2513_vm3, %v2527_v53, 0.0  ;;  %v2561_v48 = vsub.s32 0, %v5134_v39  ;;  %v2569_v13 = vsub.s32 1, %v5134_v39 }
 0x1ad   :  { %v3644_v42 = vpop.f32.mrf.mxu0 }
 0x1ae   :  { %v2515_v2 = vsel %vm2513_vm3, %v5118_v17, 0.0  ;;  %v2528_v4 = vmul.f32 %v5118_v17, %v5118_v17  ;;  %v3645_v56 = vadd.f32 %v3644_v42, %v3643_v38  ;;  %v2570_v50 = vrot.slane %v5140_v31, %v2569_v13 }
 0x1af   :  { %v2516_v59 = vadd.f32 %v2515_v2, %v2514_v44  ;;  %v3646_v18 = vpop.f32.mrf.mxu0  ;;  %v2703_v13 = vsub.s32 2, %v5134_v39 }
 0x1b0   :  { %v2532_v57 = vsel %vm2513_vm3, %v2528_v4, 0.0  ;;  %v2507_v60 = vadd.f32 %v3645_v56, %v2458_v43 }
 0x1b1   :  { %v2533_v61 = vadd.f32 %v2532_v57, %v2531_v52  ;;  %v3647_v22 = vpop.f32.mrf.mxu0  ;;  %v3918_v52 = vld [vmem:[%s5217_s2 + $0x28] sm:$0xff]   ;;  %v3919_v57 = vld [vmem:[%s5217_s2 + $0x20] sm:$0xff]  }
 0x1b2   :  { %v2517_v47 = vsel %vm2513_vm3, %v2507_v60, 0.0  ;;  %v2529_v49 = vmul.f32 %v2507_v60, %v2507_v60  ;;  %v3648_v8 = vadd.f32 %v3647_v22, %v3646_v18  ;;  %v3917_v18 = vld [vmem:[%s5217_s2 + $0x30] sm:$0xff]  }
 0x1b3   :  { %v2518_v7 = vadd.f32 %v2517_v47, %v2516_v59  ;;  %v3916_v59 = vld [vmem:[%s5217_s2 + $0x38] sm:$0xff]  }
 0x1b4   :  { %v2534_v9 = vsel %vm2513_vm3, %v2529_v49, 0.0  ;;  %v2510_v10 = vadd.f32 %v3648_v8, %v2461_v23  ;;  %3679 = vmatprep.subr.bf16.mxu1 %v3916_v59 }
 0x1b5   :  { %v2535_v30 = vadd.f32 %v2534_v9, %v2533_v61 }
 0x1b6   :  { %v2519_v63 = vsel %vm2513_vm3, %v2510_v10, 0.0  ;;  %v2530_v1 = vmul.f32 %v2510_v10, %v2510_v10 }
 0x1b7   :  { %v2520_v12 = vadd.f32 %v2519_v63, %v2518_v7 }
 0x1b8   :  { %v2536_v62 = vsel %vm2513_vm3, %v2530_v1, 0.0 }
 0x1b9   :  { %v2521_v0 = vrot.slane %v2520_v12, 4  ;;  %v2537_v5 = vadd.f32 %v2536_v62, %v2535_v30 }
 0x1bb   :  { %v2522_v58 = vadd.f32 %v2521_v0, %v2520_v12  ;;  %v2538_v24 = vrot.slane %v2537_v5, 4 }
 0x1bd   :  { %v2523_v25 = vrot.slane %v2522_v58, 2  ;;  %v2539_v20 = vadd.f32 %v2538_v24, %v2537_v5 }
 0x1bf   :  { %v2524_v11 = vadd.f32 %v2523_v25, %v2522_v58  ;;  %v2540_v21 = vrot.slane %v2539_v20, 2 }
 0x1c1   :  { %v2525_v35 = vrot.slane %v2524_v11, 1  ;;  %v2541_v37 = vadd.f32 %v2540_v21, %v2539_v20 }
 0x1c3   :  { %v2526_v34 = vadd.f32 %v2525_v35, %v2524_v11  ;;  %v2542_v27 = vrot.slane %v2541_v37, 1 }
 0x1c5   :  { %v2543_v29 = vadd.f32 %v2542_v27, %v2541_v37  ;;  %v2544_v26 = vmul.f32 0.03125, %v2526_v34 }
 0x1c7   :  { %v2545_v28 = vmul.f32 0.03125, %v2543_v29  ;;  %v2546_v36 = vmul.f32 %v2544_v26, %v2544_v26  ;;  %v2551_v6 = vsub.f32 %v2507_v60, %v2544_v26  ;;  %v2552_v40 = vsub.f32 %v2510_v10, %v2544_v26 }
 0x1c8   :  { %v2549_v46 = vsub.f32 %v5114_v41, %v2544_v26  ;;  %v2550_v55 = vsub.f32 %v5118_v17, %v2544_v26  ;;  %v2562_v41 = vrot.slane %v5140_v31, %v2561_v48 }
 0x1c9   :  { %v2547_v3 = vsub.f32 %v2545_v28, %v2546_v36 }
 0x1cb   :  { %v2548_v16 = vmax.f32 %v2547_v3, 0.0 }
 0x1cd   :  { %v2553_v32 = vadd.f32 1e-05, %v2548_v16 }
 0x1cf   :  { %3924 = vrsqrt.f32 %v2553_v32 }
 0x1dc   :  { %v3925_v51 = vpop.eup %3924 }
 0x1dd   :  { %v2557_v15 = vmul.f32 %v3925_v51, %v2551_v6  ;;  %v2558_v33 = vmul.f32 %v3925_v51, %v2552_v40  ;;  %v2555_v54 = vmul.f32 %v3925_v51, %v2549_v46  ;;  %v2556_v38 = vmul.f32 %v3925_v51, %v2550_v55 }
 0x1de   :  { %v2704_v51 = vrot.slane %v5140_v31, %v2703_v13 }
 0x1df   :  { %v2565_v53 = vmul.f32 %v2562_v41, %v2557_v15  ;;  %v2566_v17 = vmul.f32 %v2562_v41, %v2558_v33  ;;  %v2563_v43 = vmul.f32 %v2562_v41, %v2555_v54  ;;  %v2564_v14 = vmul.f32 %v2562_v41, %v2556_v38 }
 0x1e0   :  { %v2711_v41 = vsub.s32 3, %v5134_v39 }
 0x1e1   :  { %v2573_v45 = vadd.f32 %v2570_v50, %v2565_v53  ;;  %v2574_v42 = vadd.f32 %v2570_v50, %v2566_v17  ;;  %v2571_v44 = vadd.f32 %v2570_v50, %v2563_v43  ;;  %v2572_v2 = vadd.f32 %v2570_v50, %v2564_v14 }
 0x1e2   :  { %v2712_v53 = vrot.slane %v5140_v31, %v2711_v41 }
 0x1e3   :  { %v2576_v4 = vpack.c.bf16 %v2574_v42, %v2573_v45  ;;  %v2575_v56 = vpack.c.bf16 %v2572_v2, %v2571_v44 }
 0x1e5   :  { %3675 = vmatprep.mubr.msk.bf16.mxu1 %vm2513_vm3, %v2575_v56 }
 0x1e6   :  { %3676 = vmatmul.mubr.msk.bf16.vlgmr.msra.gmra.mxu1 %vm2513_vm3, %v2576_v4 }
 0x1e7   :  { %3680 = vmatpush3.bf16.msra.mxu1 %v3916_v59 }
 0x1e8   :  { %3681 = vmatprep.subr.bf16.mxu1 %v3917_v18 }
 0x1eb   :  { %3682 = vmatpush3.bf16.msra.mxu1 %v3917_v18 }
 0x1ec   :  { %3683 = vmatprep.subr.bf16.mxu1 %v3918_v52 }
 0x1ef   :  { %3684 = vmatpush3.bf16.msra.mxu1 %v3918_v52 }
 0x1f0   :  { %3685 = vmatprep.subr.bf16.mxu1 %v3919_v57 }
 0x1f3   :  { %3686 = vmatpush3.bf16.msra.mxu1 %v3919_v57 }
 0x2a6   :  { %v3677_v60 = vpop.f32.mrf.mxu1 }
 0x2a7   :  { %v2671_v49 = vmul.f32 %v3677_v60, %v3677_v60  ;;  %v2659_v30 = vsel %vm2513_vm3, %v3677_v60, 0.0 }
 0x2a8   :  { %v2641_v61 = vpop.f32.mrf.mxu1 }
 0x2a9   :  { %v2669_v23 = vmul.f32 %v2641_v61, %v2641_v61  ;;  %v2656_v8 = vsel %vm2513_vm3, %v2641_v61, 0.0  ;;  %v2676_v5 = vsel %vm2513_vm3, %v2671_v49, 0.0 }
 0x2aa   :  { %v3678_v22 = vpop.f32.mrf.mxu1 }
 0x2ab   :  { %v2673_v63 = vsel %vm2513_vm3, %v2669_v23, 0.0  ;;  %v2672_v1 = vmul.f32 %v3678_v22, %v3678_v22  ;;  %v2661_v58 = vsel %vm2513_vm3, %v3678_v22, 0.0 }
 0x2ac   :  { %v2644_v47 = vpop.f32.mrf.mxu1 }
 0x2ad   :  { %v2657_v7 = vsel %vm2513_vm3, %v2644_v47, 0.0  ;;  %v2670_v9 = vmul.f32 %v2644_v47, %v2644_v47  ;;  %v2678_v20 = vsel %vm2513_vm3, %v2672_v1, 0.0 }
 0x2ae   :  { %v2658_v10 = vadd.f32 %v2657_v7, %v2656_v8 }
 0x2af   :  { %v2674_v12 = vsel %vm2513_vm3, %v2670_v9, 0.0 }
 0x2b0   :  { %v2660_v62 = vadd.f32 %v2659_v30, %v2658_v10  ;;  %v2675_v0 = vadd.f32 %v2674_v12, %v2673_v63 }
 0x2b2   :  { %v2662_v24 = vadd.f32 %v2661_v58, %v2660_v62  ;;  %v2677_v25 = vadd.f32 %v2676_v5, %v2675_v0 }
 0x2b4   :  { %v2663_v11 = vrot.slane %v2662_v24, 4  ;;  %v2679_v21 = vadd.f32 %v2678_v20, %v2677_v25 }
 0x2b6   :  { %v2664_v35 = vadd.f32 %v2663_v11, %v2662_v24  ;;  %v2680_v37 = vrot.slane %v2679_v21, 4 }
 0x2b8   :  { %v2665_v34 = vrot.slane %v2664_v35, 2  ;;  %v2681_v27 = vadd.f32 %v2680_v37, %v2679_v21 }
 0x2ba   :  { %v2666_v29 = vadd.f32 %v2665_v34, %v2664_v35  ;;  %v2682_v26 = vrot.slane %v2681_v27, 2 }
 0x2bc   :  { %v2667_v28 = vrot.slane %v2666_v29, 1  ;;  %v2683_v36 = vadd.f32 %v2682_v26, %v2681_v27 }
 0x2be   :  { %v2668_v6 = vadd.f32 %v2667_v28, %v2666_v29  ;;  %v2684_v40 = vrot.slane %v2683_v36, 1 }
 0x2c0   :  { %v2685_v46 = vadd.f32 %v2684_v40, %v2683_v36  ;;  %v2686_v55 = vmul.f32 0.03125, %v2668_v6 }
 0x2c2   :  { %v2687_v3 = vmul.f32 0.03125, %v2685_v46  ;;  %v2688_v16 = vmul.f32 %v2686_v55, %v2686_v55  ;;  %v2692_v50 = vsub.f32 %v2644_v47, %v2686_v55  ;;  %v2691_v15 = vsub.f32 %v2641_v61, %v2686_v55  ;;  %v3921_v61 = vld [vmem:[%s5217_s2 + $0x50] sm:$0xff]   ;;  %v3923_v47 = vld [vmem:[%s5217_s2 + $0x40] sm:$0xff]  }
 0x2c3   :  { %v2693_v33 = vsub.f32 %v3677_v60, %v2686_v55  ;;  %v2694_v54 = vsub.f32 %v3678_v22, %v2686_v55  ;;  %v3920_v60 = vld [vmem:[%s5217_s2 + $0x58] sm:$0xff]   ;;  %v3922_v22 = vld [vmem:[%s5217_s2 + $0x48] sm:$0xff]  }
 0x2c4   :  { %v2689_v32 = vsub.f32 %v2687_v3, %v2688_v16  ;;  %3691 = vmatprep.subr.bf16.mxu0 %v3920_v60 }
 0x2c5   :  { %3692 = vmatpush3.bf16.msra.mxu0 %v3920_v60 }
 0x2c6   :  { %v2690_v19 = vmax.f32 %v2689_v32, 0.0  ;;  %3693 = vmatprep.subr.bf16.mxu0 %v3921_v61 }
 0x2c8   :  { %v2695_v48 = vadd.f32 1e-05, %v2690_v19 }
 0x2c9   :  { %3694 = vmatpush3.bf16.msra.mxu0 %v3921_v61 }
 0x2ca   :  { %3926 = vrsqrt.f32 %v2695_v48  ;;  %3695 = vmatprep.subr.bf16.mxu0 %v3922_v22 }
 0x2cd   :  { %3696 = vmatpush3.bf16.msra.mxu0 %v3922_v22 }
 0x2ce   :  { %3697 = vmatprep.subr.bf16.mxu0 %v3923_v47 }
 0x2d1   :  { %3698 = vmatpush3.bf16.msra.mxu0 %v3923_v47 }
 0x2d7   :  { %v3927_v38 = vpop.eup %3926 }
 0x2d8   :  { %v2698_v17 = vmul.f32 %v3927_v38, %v2692_v50  ;;  %v2697_v43 = vmul.f32 %v3927_v38, %v2691_v15  ;;  %v2699_v14 = vmul.f32 %v3927_v38, %v2693_v33  ;;  %v2700_v45 = vmul.f32 %v3927_v38, %v2694_v54 }
 0x2d9   :  { %v2845_v33 = vsub.s32 4, %v5134_v39  ;;  %v2853_v54 = vsub.s32 5, %v5134_v39 }
 0x2da   :  { %v2706_v42 = vmul.f32 %v2704_v51, %v2698_v17  ;;  %v2705_v44 = vmul.f32 %v2704_v51, %v2697_v43  ;;  %v2707_v2 = vmul.f32 %v2704_v51, %v2699_v14  ;;  %v2708_v4 = vmul.f32 %v2704_v51, %v2700_v45 }
 0x2db   :  { %v2846_v38 = vrot.slane %v5140_v31, %v2845_v33 }
 0x2dc   :  { %v2713_v56 = vadd.f32 %v2712_v53, %v2705_v44  ;;  %v2714_v59 = vadd.f32 %v2712_v53, %v2706_v42  ;;  %v2715_v18 = vadd.f32 %v2712_v53, %v2707_v2  ;;  %v2716_v52 = vadd.f32 %v2712_v53, %v2708_v4 }
 0x2dd   :  { %v2854_v42 = vrot.slane %v5140_v31, %v2853_v54 }
 0x2de   :  { %v2717_v57 = vpack.c.bf16 %v2714_v59, %v2713_v56  ;;  %v2718_v23 = vpack.c.bf16 %v2716_v52, %v2715_v18 }
 0x2e0   :  { %3687 = vmatprep.mubr.msk.bf16.mxu1 %vm2513_vm3, %v2717_v57 }
 0x2e1   :  { %3688 = vmatmul.mubr.msk.bf16.vlgmr.msra.gmra.mxu1 %vm2513_vm3, %v2718_v23 }
 0x3a1   :  { %v3689_v49 = vpop.f32.mrf.mxu1 }
 0x3a2   :  { %v2813_v30 = vmul.f32 %v3689_v49, %v3689_v49  ;;  %v2801_v0 = vsel %vm2513_vm3, %v3689_v49, 0.0 }
 0x3a3   :  { %v2783_v8 = vpop.f32.mrf.mxu1 }
 0x3a4   :  { %v2811_v9 = vmul.f32 %v2783_v8, %v2783_v8  ;;  %v2798_v63 = vsel %vm2513_vm3, %v2783_v8, 0.0  ;;  %v2818_v11 = vsel %vm2513_vm3, %v2813_v30, 0.0 }
 0x3a5   :  { %v3690_v7 = vpop.f32.mrf.mxu1 }
 0x3a6   :  { %v2815_v5 = vsel %vm2513_vm3, %v2811_v9, 0.0  ;;  %v2814_v58 = vmul.f32 %v3690_v7, %v3690_v7  ;;  %v2803_v21 = vsel %vm2513_vm3, %v3690_v7, 0.0 }
 0x3a7   :  { %v2786_v10 = vpop.f32.mrf.mxu1 }
 0x3a8   :  { %v2799_v1 = vsel %vm2513_vm3, %v2786_v10, 0.0  ;;  %v2812_v12 = vmul.f32 %v2786_v10, %v2786_v10  ;;  %v2820_v34 = vsel %vm2513_vm3, %v2814_v58, 0.0 }
 0x3a9   :  { %v2800_v62 = vadd.f32 %v2799_v1, %v2798_v63 }
 0x3aa   :  { %v2816_v24 = vsel %vm2513_vm3, %v2812_v12, 0.0 }
 0x3ab   :  { %v2802_v25 = vadd.f32 %v2801_v0, %v2800_v62  ;;  %v2817_v20 = vadd.f32 %v2816_v24, %v2815_v5 }
 0x3ad   :  { %v2804_v35 = vadd.f32 %v2803_v21, %v2802_v25  ;;  %v2819_v37 = vadd.f32 %v2818_v11, %v2817_v20 }
 0x3af   :  { %v2805_v27 = vrot.slane %v2804_v35, 4  ;;  %v2821_v29 = vadd.f32 %v2820_v34, %v2819_v37 }
 0x3b1   :  { %v2806_v26 = vadd.f32 %v2805_v27, %v2804_v35  ;;  %v2822_v28 = vrot.slane %v2821_v29, 4 }
 0x3b3   :  { %v2807_v36 = vrot.slane %v2806_v26, 2  ;;  %v2823_v6 = vadd.f32 %v2822_v28, %v2821_v29 }
 0x3b5   :  { %v2808_v40 = vadd.f32 %v2807_v36, %v2806_v26  ;;  %v2824_v46 = vrot.slane %v2823_v6, 2 }
 0x3b7   :  { %v2809_v55 = vrot.slane %v2808_v40, 1  ;;  %v2825_v3 = vadd.f32 %v2824_v46, %v2823_v6 }
 0x3b9   :  { %v2810_v16 = vadd.f32 %v2809_v55, %v2808_v40  ;;  %v2826_v32 = vrot.slane %v2825_v3, 1 }
 0x3bb   :  { %v2827_v19 = vadd.f32 %v2826_v32, %v2825_v3  ;;  %v2828_v48 = vmul.f32 0.03125, %v2810_v16 }
 0x3bd   :  { %v2829_v13 = vmul.f32 0.03125, %v2827_v19  ;;  %v2830_v41 = vmul.f32 %v2828_v48, %v2828_v48  ;;  %v2833_v53 = vsub.f32 %v2783_v8, %v2828_v48  ;;  %v2834_v17 = vsub.f32 %v2786_v10, %v2828_v48 }
 0x3be   :  { %v2835_v43 = vsub.f32 %v3689_v49, %v2828_v48  ;;  %v2836_v14 = vsub.f32 %v3690_v7, %v2828_v48 }
 0x3bf   :  { %v2831_v51 = vsub.f32 %v2829_v13, %v2830_v41 }
 0x3c1   :  { %v2832_v50 = vmax.f32 %v2831_v51, 0.0 }
 0x3c3   :  { %v2837_v15 = vadd.f32 1e-05, %v2832_v50 }
 0x3c5   :  { %3928 = vrsqrt.f32 %v2837_v15 }
 0x3d2   :  { %v3929_v45 = vpop.eup %3928 }
 0x3d3   :  { %v2839_v44 = vmul.f32 %v3929_v45, %v2833_v53  ;;  %v2840_v2 = vmul.f32 %v3929_v45, %v2834_v17  ;;  %v2841_v4 = vmul.f32 %v3929_v45, %v2835_v43  ;;  %v2842_v56 = vmul.f32 %v3929_v45, %v2836_v14 }
 0x3d5   :  { %v2847_v59 = vmul.f32 %v2846_v38, %v2839_v44  ;;  %v2848_v18 = vmul.f32 %v2846_v38, %v2840_v2  ;;  %v2849_v52 = vmul.f32 %v2846_v38, %v2841_v4  ;;  %v2850_v57 = vmul.f32 %v2846_v38, %v2842_v56 }
 0x3d6   :  { %v3003_v44 = vsub.s32 6, %v5134_v39  ;;  %v3011_v2 = vsub.s32 7, %v5134_v39 }
 0x3d7   :  { %v2855_v23 = vadd.f32 %v2854_v42, %v2847_v59  ;;  %v2856_v60 = vadd.f32 %v2854_v42, %v2848_v18  ;;  %v2857_v61 = vadd.f32 %v2854_v42, %v2849_v52  ;;  %v2858_v22 = vadd.f32 %v2854_v42, %v2850_v57 }
 0x3d8   :  { %v3004_v4 = vrot.slane %v5140_v31, %v3003_v44 }
 0x3d9   :  { %v3271_v47 = vmul.f32 -1.442695, %v2855_v23  ;;  %v3272_v8 = vmul.f32 -1.442695, %v2856_v60  ;;  %v3273_v9 = vmul.f32 -1.442695, %v2857_v61  ;;  %v3012_v23 = vrot.slane %v5140_v31, %v3011_v2 }
 0x3da   :  { %v3274_v49 = vmul.f32 -1.442695, %v2858_v22 }
 0x3db   :  { %3930 = vpow2.f32 %v3271_v47 }
 0x3dc   :  { %3932 = vpow2.f32 %v3272_v8 }
 0x3dd   :  { %3934 = vpow2.f32 %v3273_v9 }
 0x3de   :  { %3936 = vpow2.f32 %v3274_v49 }
 0x3e8   :  { %v3931_v7 = vpop.eup %3930 }
 0x3e9   :  { %v3933_v10 = vpop.eup %3932  ;;  %v2871_v30 = vadd.f32 1.0, %v3931_v7 }
 0x3ea   :  { %v3935_v63 = vpop.eup %3934  ;;  %v2872_v1 = vadd.f32 1.0, %v3933_v10 }
 0x3eb   :  { %v3937_v12 = vpop.eup %3936  ;;  %v2873_v62 = vadd.f32 1.0, %v3935_v63  ;;  %3938 = vrcp.f32 %v2871_v30 }
 0x3ec   :  { %v2874_v0 = vadd.f32 1.0, %v3937_v12  ;;  %3940 = vrcp.f32 %v2872_v1 }
 0x3ed   :  { %3942 = vrcp.f32 %v2873_v62 }
 0x3ee   :  { %3944 = vrcp.f32 %v2874_v0 }
 0x3f8   :  { %v3939_v5 = vpop.eup %3938 }
 0x3f9   :  { %v3941_v58 = vpop.eup %3940 }
 0x3fa   :  { %v3943_v24 = vpop.eup %3942  ;;  %v2883_v25 = vpack.c.bf16 %v3941_v58, %v3939_v5 }
 0x3fb   :  { %v3945_v20 = vpop.eup %3944 }
 0x3fc   :  { %3699 = vmatprep.mubr.msk.bf16.mxu0 %vm2513_vm3, %v2883_v25  ;;  %v2884_v11 = vpack.c.bf16 %v3945_v20, %v3943_v24 }
 0x3fe   :  { %3700 = vmatmul.mubr.msk.bf16.vlgmr.msra.gmra.mxu0 %vm2513_vm3, %v2884_v11 }
 0x4be   :  { %v3701_v21 = vpop.f32.mrf.mxu0 }
 0x4bf   :  { %v2975_v28 = vmul.f32 %v3701_v21, %v3701_v21 }
 0x4c0   :  { %v2949_v35 = vpop.f32.mrf.mxu0 }
 0x4c1   :  { %v2973_v27 = vmul.f32 %v2949_v35, %v2949_v35 }
 0x4c2   :  { %v3702_v37 = vpop.f32.mrf.mxu0 }
 0x4c3   :  { %v2976_v40 = vmul.f32 %v3702_v37, %v3702_v37 }
 0x4c4   :  { %v2952_v34 = vpop.f32.mrf.mxu0 }
 0x4c5   :  { %v2964_v29 = vadd.f32 %v2952_v34, %v2949_v35  ;;  %v2974_v26 = vmul.f32 %v2952_v34, %v2952_v34 }
 0x4c7   :  { %v2965_v36 = vadd.f32 %v3701_v21, %v2964_v29  ;;  %v2977_v6 = vadd.f32 %v2974_v26, %v2973_v27 }
 0x4c9   :  { %v2966_v46 = vadd.f32 %v3702_v37, %v2965_v36  ;;  %v2978_v55 = vadd.f32 %v2977_v6, %v2975_v28 }
 0x4cb   :  { %v2967_v3 = vrot.slane %v2966_v46, 4  ;;  %v2979_v16 = vadd.f32 %v2978_v55, %v2976_v40 }
 0x4cd   :  { %v2968_v32 = vadd.f32 %v2967_v3, %v2966_v46  ;;  %v2980_v19 = vrot.slane %v2979_v16, 4 }
 0x4cf   :  { %v2969_v48 = vrot.slane %v2968_v32, 2  ;;  %v2981_v13 = vadd.f32 %v2980_v19, %v2979_v16 }
 0x4d1   :  { %v2970_v41 = vadd.f32 %v2969_v48, %v2968_v32  ;;  %v2982_v51 = vrot.slane %v2981_v13, 2 }
 0x4d3   :  { %v2971_v50 = vrot.slane %v2970_v41, 1  ;;  %v2983_v15 = vadd.f32 %v2982_v51, %v2981_v13 }
 0x4d5   :  { %v2972_v33 = vadd.f32 %v2971_v50, %v2970_v41  ;;  %v2984_v54 = vrot.slane %v2983_v15, 1 }
 0x4d7   :  { %v2985_v38 = vadd.f32 %v2984_v54, %v2983_v15  ;;  %v2986_v53 = vmul.f32 0.03125, %v2972_v33 }
 0x4d9   :  { %v2987_v17 = vmul.f32 0.03125, %v2985_v38  ;;  %v2988_v43 = vmul.f32 %v2986_v53, %v2986_v53  ;;  %v2991_v56 = vsub.f32 %v2949_v35, %v2986_v53  ;;  %v2992_v59 = vsub.f32 %v2952_v34, %v2986_v53 }
 0x4da   :  { %v2993_v18 = vsub.f32 %v3701_v21, %v2986_v53  ;;  %v2994_v52 = vsub.f32 %v3702_v37, %v2986_v53 }
 0x4db   :  { %v2989_v14 = vsub.f32 %v2987_v17, %v2988_v43 }
 0x4dd   :  { %v2990_v45 = vmax.f32 %v2989_v14, 0.0 }
 0x4df   :  { %v2995_v42 = vadd.f32 1e-05, %v2990_v45 }
 0x4e1   :  { %3946 = vrsqrt.f32 %v2995_v42 }
 0x4ee   :  { %v3947_v57 = vpop.eup %3946 }
 0x4ef   :  { %v2997_v60 = vmul.f32 %v3947_v57, %v2991_v56  ;;  %v2998_v61 = vmul.f32 %v3947_v57, %v2992_v59  ;;  %v2999_v22 = vmul.f32 %v3947_v57, %v2993_v18  ;;  %v3000_v47 = vmul.f32 %v3947_v57, %v2994_v52 }
 0x4f1   :  { %v3005_v8 = vmul.f32 %v3004_v4, %v2997_v60  ;;  %v3006_v9 = vmul.f32 %v3004_v4, %v2998_v61  ;;  %v3007_v49 = vmul.f32 %v3004_v4, %v2999_v22  ;;  %v3008_v7 = vmul.f32 %v3004_v4, %v3000_v47 }
 0x4f3   :  { %v3013_v10 = vadd.f32 %v3012_v23, %v3005_v8  ;;  %v3014_v30 = vadd.f32 %v3012_v23, %v3006_v9  ;;  %v3015_v39 = vadd.f32 %v3012_v23, %v3007_v49  ;;  %v3016_v63 = vadd.f32 %v3012_v23, %v3008_v7 }
 0x4f5   :  { %v3281_v1 = vmul.f32 -1.442695, %v3013_v10  ;;  %v3282_v12 = vmul.f32 -1.442695, %v3014_v30  ;;  %v3283_v62 = vmul.f32 -1.442695, %v3015_v39 }
 0x4f6   :  { %v3284_v0 = vmul.f32 -1.442695, %v3016_v63 }
 0x4f7   :  { %3948 = vpow2.f32 %v3281_v1 }
 0x4f8   :  { %3950 = vpow2.f32 %v3282_v12 }
 0x4f9   :  { %3952 = vpow2.f32 %v3283_v62 }
 0x4fa   :  { %3954 = vpow2.f32 %v3284_v0 }
 0x504   :  { %v3949_v31 = vpop.eup %3948 }
 0x505   :  { %v3951_v5 = vpop.eup %3950  ;;  %v3029_v58 = vadd.f32 1.0, %v3949_v31 }
 0x506   :  { %v3953_v24 = vpop.eup %3952  ;;  %v3030_v25 = vadd.f32 1.0, %v3951_v5 }
 0x507   :  { %v3955_v20 = vpop.eup %3954  ;;  %v3031_v11 = vadd.f32 1.0, %v3953_v24  ;;  %3956 = vrcp.f32 %v3029_v58 }
 0x508   :  { %v3032_v21 = vadd.f32 1.0, %v3955_v20  ;;  %3958 = vrcp.f32 %v3030_v25 }
 0x509   :  { %3960 = vrcp.f32 %v3031_v11 }
 0x50a   :  { %3962 = vrcp.f32 %v3032_v21 }
 0x514   :  { %v3957_v35 = vpop.eup %3956 }
 0x515   :  { %v3959_v37 = vpop.eup %3958  ;;  %3041 = vst [vmem:[%s5219_s4] sm:$0xff] %v3957_v35 }
 0x516   :  { %v3961_v34 = vpop.eup %3960  ;;  %3042 = vst [vmem:[%s5219_s4 + $0x8] sm:$0xff] %v3959_v37 }
 0x517   :  { %v3963_v27 = vpop.eup %3962  ;;  %3043 = vst [vmem:[%s5219_s4 + $0x10] sm:$0xff] %v3961_v34 }
 0x518   :  { %3044 = vst [vmem:[%s5219_s4 + $0x18] sm:$0xff] %v3963_v27 }

</bundles_post_ra>
